<compile_context>
chip_gen: v7x
topology: tpu7x:2x2x1
jax: 0.10.0
libtpu: 0.0.40
codegen_flags: <defaults>
</compile_context>

<pallas_src>
import math

import jax
import jax.numpy as jnp
import numpy as np
from jax import lax
from jax.experimental import pallas as pl
from jax.experimental.pallas import tpu as pltpu

# ---------------- small, TPU-friendly shapes (scaled-down module) -------------
B = 2          # batch
P = 4          # patch grid side (num_patch=4 -> N = 16 tokens)
N = P * P      # tokens per image
DFEAT = 256    # backbone channel dim (stands in for 2048)
D = 128        # hidden_dim (stands in for 768)
H = 8          # nheads
DH = D // H    # head dim
FFN = 256      # dim_feedforward (stands in for 2048)
L = 2          # num_encoder_layers (stands in for 6)
EPS = 1e-5     # layer_norm_eps
MM_DTYPE = jnp.bfloat16   # matmul operand dtype (accumulation stays f32)


def _ln(x, g, b):
    mu = jnp.mean(x, axis=-1, keepdims=True)
    var = jnp.mean((x - mu) ** 2, axis=-1, keepdims=True)
    return (x - mu) * jax.lax.rsqrt(var + EPS) * g + b


# ---------------------------- fused Pallas kernel ------------------------------
def encoder_kernel(x_ref, w_emb_ref, posb_ref,
                   wqkv_ref, bqkv_ref, wo_ref, bo_ref, g1_ref, be1_ref,
                   w1_ref, bb1_ref, w2_ref, bb2_ref, g2_ref, be2_ref,
                   out_ref, h_ref):
    # grid = (B, L): one grid step == one (image, layer) pair.  The running
    # activation h lives in the VMEM scratch h_ref for the whole layer stack.
    l = pl.program_id(1)

    @pl.when(l == 0)
    def _():
        # Linear embedding + positional encoding.  Contracting over the leading
        # channel axis of x (DFEAT, N) folds the NCHW->token relayout into the
        # matmul (no separate HBM transpose pass).
        h_ref[...] = lax.dot_general(
            x_ref[0], w_emb_ref[...], (((0,), (0,)), ((), ())),
            preferred_element_type=jnp.float32) + posb_ref[...]        # (N, D)

    h_bf = h_ref[...].astype(MM_DTYPE)                                 # (N, D)

    # ---- self attention: one fused (N,D)x(D,3D) QKV matmul ------------------
    # (1/sqrt(DH) already folded into the Q columns of wqkv / bqkv offline.)
    qkv = jnp.dot(h_bf, wqkv_ref[0],
                  preferred_element_type=jnp.float32) + bqkv_ref[0]    # (N, 3D)
    q, k, v = qkv[:, :D], qkv[:, D:2 * D], qkv[:, 2 * D:]

    o_heads = []
    for hd in range(H):   # per-head (N,N)/(N,DH) work is tiny and unavoidable
        sl = slice(hd * DH, (hd + 1) * DH)
        qh = q[:, sl].astype(MM_DTYPE)
        kh = k[:, sl].astype(MM_DTYPE)
        vh = v[:, sl].astype(MM_DTYPE)
        s = lax.dot_general(qh, kh, (((1,), (1,)), ((), ())),
                            preferred_element_type=jnp.float32)        # (N, N)
        s = s - jnp.max(s, axis=-1, keepdims=True)
        p = jnp.exp(s)
        p = p / jnp.sum(p, axis=-1, keepdims=True)   # exact softmax (parity)
        o_heads.append(jnp.dot(p.astype(MM_DTYPE), vh,
                               preferred_element_type=jnp.float32))    # (N, DH)
    o_flat = jnp.concatenate(o_heads, axis=-1)                         # (N, D)

    # ---- single flat out-projection -----------------------------------------
    attn = jnp.dot(o_flat.astype(MM_DTYPE), wo_ref[0],
                   preferred_element_type=jnp.float32) + bo_ref[0]     # (N, D)

    # CustomTransformerEncoderLayer residual structure (as in the source):
    #   a = LN1(MHA(h)); out = LN2(W2 relu(W1 a)) + a       (no residual on h)
    a = _ln(attn, g1_ref[0], be1_ref[0])
    f = jnp.dot(a.astype(MM_DTYPE), w1_ref[0],
                preferred_element_type=jnp.float32) + bb1_ref[0]
    f = jnp.maximum(f, 0.0)
    f = jnp.dot(f.astype(MM_DTYPE), w2_ref[0],
                preferred_element_type=jnp.float32) + bb2_ref[0]
    f = _ln(f, g2_ref[0], be2_ref[0])
    h_new = f + a
    h_ref[...] = h_new

    @pl.when(l == pl.num_programs(1) - 1)
    def _():
        out_ref[0] = jnp.mean(h_new, axis=0, keepdims=True)            # (1, D)


# ------------------------------ wrappers ---------------------------------------
def prepare_kernel_params(params):
    """One-time layout prep: (L, ...) weight stacks, lane-dense biases,
    bf16 weights at matmul boundaries, 1/sqrt(DH) folded into Q weights."""
    w_emb = params["w_emb"].astype(MM_DTYPE)                           # (DFEAT, D)
    posb = (params["pos"][0] + params["b_emb"]).astype(jnp.float32)    # (N, D)

    scale = 1.0 / math.sqrt(DH)     # exact (power of two) for DH=16
    acc = {k: [] for k in ("wqkv", "bqkv", "wo", "bo", "g1", "be1",
                           "w1", "bb1", "w2", "bb2", "g2", "be2")}
    for (wqkv, bqkv, wo, bo, g1, be1, w1, bb1, w2, bb2, g2, be2) in params["layers"]:
        wqkv_s = jnp.concatenate([wqkv[:, :D] * scale, wqkv[:, D:]], axis=1)
        bqkv_s = jnp.concatenate([bqkv[:, :D] * scale, bqkv[:, D:]], axis=1)
        acc["wqkv"].append(wqkv_s.astype(MM_DTYPE))      # (D, 3D)
        acc["bqkv"].append(bqkv_s.astype(jnp.float32))   # (1, 3D) lane-dense
        acc["wo"].append(wo.astype(MM_DTYPE))            # (D, D)
        acc["bo"].append(bo)
        acc["g1"].append(g1); acc["be1"].append(be1)
        acc["w1"].append(w1.astype(MM_DTYPE)); acc["bb1"].append(bb1)
        acc["w2"].append(w2.astype(MM_DTYPE)); acc["bb2"].append(bb2)
        acc["g2"].append(g2); acc["be2"].append(be2)

    stk = lambda name: jnp.stack(acc[name], axis=0)
    return (w_emb, posb,
            stk("wqkv"), stk("bqkv"), stk("wo"), stk("bo"),
            stk("g1"), stk("be1"), stk("w1"), stk("bb1"),
            stk("w2"), stk("bb2"), stk("g2"), stk("be2"))


@jax.jit
def encoder_forward(features_nchw, kparams):
    # 'b d p1 p2 -> b d (p1 p2)' is a free reshape; the channel-major layout is
    # consumed directly by the in-kernel embedding matmul (contract over axis 0).
    x = features_nchw.reshape(B, DFEAT, N).astype(MM_DTYPE)

    in_specs = [
        pl.BlockSpec((1, DFEAT, N), lambda b, l: (b, 0, 0)),    # feature map
        pl.BlockSpec((DFEAT, D), lambda b, l: (0, 0)),          # w_emb (resident)
        pl.BlockSpec((N, D), lambda b, l: (0, 0)),              # pos + b_emb
    ]
    # per-layer slabs, streamed (and auto double-buffered) along the l axis
    layer_shapes = [(D, 3 * D), (1, 3 * D), (D, D), (1, D), (1, D), (1, D),
                    (D, FFN), (1, FFN), (FFN, D), (1, D), (1, D), (1, D)]
    in_specs += [pl.BlockSpec((1,) + s, lambda b, l: (l, 0, 0))
                 for s in layer_shapes]

    out = pl.pallas_call(
        encoder_kernel,
        out_shape=jax.ShapeDtypeStruct((B, 1, D), jnp.float32),
        grid_spec=pltpu.PrefetchScalarGridSpec(
            num_scalar_prefetch=0,
            grid=(B, L),
            in_specs=in_specs,
            out_specs=pl.BlockSpec((1, 1, D), lambda b, l: (b, 0, 0)),
            scratch_shapes=[pltpu.VMEM((N, D), jnp.float32)]),   # carried h
        compiler_params=pltpu.CompilerParams(
            dimension_semantics=("parallel", "arbitrary"),   # batch over TCs (v7x)
            vmem_limit_bytes=32 * 1024 * 1024),              # raise at prod sizes
    )(x, *kparams)
    return out[:, 0, :]


# --------------------------- pure-JAX reference ---------------------------------
def reference_forward(features_nchw, params, matmul_dtype=jnp.float32):
    def mm(a, b):
        return jax.lax.dot_general(
            a.astype(matmul_dtype), b.astype(matmul_dtype),
            (((a.ndim - 1,), (0,)), ((), ())),
            preferred_element_type=jnp.float32)

    x = jnp.transpose(features_nchw, (0, 2, 3, 1)).reshape(B, N, DFEAT)
    h = mm(x, params["w_emb"]) + params["b_emb"] + params["pos"]
    for (wqkv, bqkv, wo, bo, g1, be1, w1, bb1, w2, bb2, g2, be2) in params["layers"]:
        qkv = mm(h, wqkv) + bqkv
        q, k, v = jnp.split(qkv, 3, axis=-1)
        q = q.reshape(B, N, H, DH)
        k = k.reshape(B, N, H, DH)
        v = v.reshape(B, N, H, DH)
        s = jnp.einsum("bnhd,bmhd->bhnm",
                       q.astype(matmul_dtype), k.astype(matmul_dtype),
                       preferred_element_type=jnp.float32) / math.sqrt(DH)
        p = jax.nn.softmax(s, axis=-1)
        a = jnp.einsum("bhnm,bmhd->bnhd",
                       p.astype(matmul_dtype), v.astype(matmul_dtype),
                       preferred_element_type=jnp.float32).reshape(B, N, D)
        a = mm(a, wo) + bo
        a = _ln(a, g1, be1)
        f = jnp.maximum(mm(a, w1) + bb1, 0.0)
        f = mm(f, w2) + bb2
        f = _ln(f, g2, be2)
        h = f + a
    return jnp.mean(h, axis=1)


# --------------------------------- params ---------------------------------------
def init_params(key):
    ks = jax.random.split(key, 3 + L)
    scale = 0.02
    params = {
        "w_emb": scale * jax.random.normal(ks[0], (DFEAT, D), jnp.float32),
        "b_emb": scale * jax.random.normal(ks[1], (1, D), jnp.float32),
        "pos": scale * jax.random.normal(ks[2], (1, N, D), jnp.float32),
        "layers": [],
    }
    for l in range(L):
        lk = jax.random.split(ks[3 + l], 8)
        wqkv = scale * jax.random.normal(lk[0], (D, 3 * D), jnp.float32)
        bqkv = scale * jax.random.normal(lk[1], (1, 3 * D), jnp.float32)
        wo = scale * jax.random.normal(lk[2], (D, D), jnp.float32)
        bo = scale * jax.random.normal(lk[3], (1, D), jnp.float32)
        g1 = jnp.ones((1, D), jnp.float32)
        be1 = jnp.zeros((1, D), jnp.float32)
        w1 = scale * jax.random.normal(lk[4], (D, FFN), jnp.float32)
        bb1 = scale * jax.random.normal(lk[5], (1, FFN), jnp.float32)
        w2 = scale * jax.random.normal(lk[6], (FFN, D), jnp.float32)
        bb2 = scale * jax.random.normal(lk[7], (1, D), jnp.float32)
        g2 = jnp.ones((1, D), jnp.float32)
        be2 = jnp.zeros((1, D), jnp.float32)
        params["layers"].append(
            (wqkv, bqkv, wo, bo, g1, be1, w1, bb1, w2, bb2, g2, be2))
    return params


if __name__ == "__main__":
    key = jax.random.PRNGKey(0)
    k_feat, k_par = jax.random.split(key)
    # backbone feature map (NCHW), standing in for the resnet50 output
    features = jax.random.normal(k_feat, (B, DFEAT, P, P), jnp.float32)
    params = init_params(k_par)
    kparams = prepare_kernel_params(params)

    out = jax.block_until_ready(encoder_forward(features, kparams))

    # Primary check: matched-precision reference (same bf16-at-matmul-boundary
    # numerics, f32 accumulation, exact softmax) -> only trivial accumulation
    # order / transcendental-implementation differences remain.
    ref_bf16 = reference_forward(features, params, matmul_dtype=MM_DTYPE)
    np.testing.assert_allclose(np.asarray(out), np.asarray(ref_bf16),
                               rtol=5e-3, atol=5e-3)
    # Sanity check vs the full-f32 reference (looser: bf16 matmul rounding).
    ref_f32 = reference_forward(features, params, matmul_dtype=jnp.float32)
    np.testing.assert_allclose(np.asarray(out), np.asarray(ref_f32),
                               rtol=1e-1, atol=1e-1)

    assert out.shape == (B, D) and not bool(jnp.isnan(out).any())
    print("KERNEL_OK")
</pallas_src>

<mosaic_0001>
module attributes {stable_mosaic.version = 11 : i64} {
  func.func @encoder_kernel(%arg0: i32, %arg1: i32, %arg2: memref<1x256x16xbf16, #tpu.memory_space<vmem>>, %arg3: memref<256x128xbf16, #tpu.memory_space<vmem>>, %arg4: memref<16x128xf32, #tpu.memory_space<vmem>>, %arg5: memref<1x128x384xbf16, #tpu.memory_space<vmem>>, %arg6: memref<1x1x384xf32, #tpu.memory_space<vmem>>, %arg7: memref<1x128x128xbf16, #tpu.memory_space<vmem>>, %arg8: memref<1x1x128xf32, #tpu.memory_space<vmem>>, %arg9: memref<1x1x128xf32, #tpu.memory_space<vmem>>, %arg10: memref<1x1x128xf32, #tpu.memory_space<vmem>>, %arg11: memref<1x128x256xbf16, #tpu.memory_space<vmem>>, %arg12: memref<1x1x256xf32, #tpu.memory_space<vmem>>, %arg13: memref<1x256x128xbf16, #tpu.memory_space<vmem>>, %arg14: memref<1x1x128xf32, #tpu.memory_space<vmem>>, %arg15: memref<1x1x128xf32, #tpu.memory_space<vmem>>, %arg16: memref<1x1x128xf32, #tpu.memory_space<vmem>>, %arg17: memref<1x1x128xf32, #tpu.memory_space<vmem>>, %arg18: memref<16x128xf32, #tpu.memory_space<vmem>>) attributes {dimension_semantics = [#tpu.dimension_semantics<parallel>, #tpu.dimension_semantics<arbitrary>], iteration_bounds = array<i64: 2, 2>, scalar_prefetch = 0 : i64, scratch_operands = 1 : i64, tpu.core_type = #tpu.core_type<tc>, window_params = [{transform_indices = @transform_0, window_bounds = array<i64: 1, 256, 16>}, {pipeline_mode = #tpu.pipeline_mode<synchronous>, transform_indices = @transform_1, window_bounds = array<i64: 256, 128>}, {pipeline_mode = #tpu.pipeline_mode<synchronous>, transform_indices = @transform_2, window_bounds = array<i64: 16, 128>}, {transform_indices = @transform_3, window_bounds = array<i64: 1, 128, 384>}, {transform_indices = @transform_4, window_bounds = array<i64: 1, 1, 384>}, {transform_indices = @transform_5, window_bounds = array<i64: 1, 128, 128>}, {transform_indices = @transform_6, window_bounds = array<i64: 1, 1, 128>}, {transform_indices = @transform_7, window_bounds = array<i64: 1, 1, 128>}, {transform_indices = @transform_8, window_bounds = array<i64: 1, 1, 128>}, {transform_indices = @transform_9, window_bounds = array<i64: 1, 128, 256>}, {transform_indices = @transform_10, window_bounds = array<i64: 1, 1, 256>}, {transform_indices = @transform_11, window_bounds = array<i64: 1, 256, 128>}, {transform_indices = @transform_12, window_bounds = array<i64: 1, 1, 128>}, {transform_indices = @transform_13, window_bounds = array<i64: 1, 1, 128>}, {transform_indices = @transform_14, window_bounds = array<i64: 1, 1, 128>}, {transform_indices = @transform_15, window_bounds = array<i64: 1, 1, 128>}]} {
    %c0_i32 = arith.constant 0 : i32
    %0 = arith.cmpi eq, %arg1, %c0_i32 : i32
    %1 = arith.extui %0 : i1 to i32
    %c0_i32_0 = arith.constant 0 : i32
    %2 = arith.cmpi ne, %1, %c0_i32_0 : i32
    scf.if %2 {
      %c0_87 = arith.constant 0 : index
      %c0_88 = arith.constant 0 : index
      %c0_89 = arith.constant 0 : index
      %243 = vector.load %arg2[%c0_87, %c0_88, %c0_89] : memref<1x256x16xbf16, #tpu.memory_space<vmem>>, vector<1x256x16xbf16>
      %244 = vector.shape_cast %243 : vector<1x256x16xbf16> to vector<256x16xbf16>
      %c0_90 = arith.constant 0 : index
      %c0_91 = arith.constant 0 : index
      %245 = vector.load %arg3[%c0_90, %c0_91] : memref<256x128xbf16, #tpu.memory_space<vmem>>, vector<256x128xbf16>
      %cst_92 = arith.constant dense<0.000000e+00> : vector<16x128xf32>
      %246 = tpu.matmul %244, %245, %cst_92 {dimension_numbers = #tpu.dot_dimension_numbers<[0], [0], [1], [1], [0, 1, 1, 1], [], []>} : vector<256x16xbf16>, vector<256x128xbf16>, vector<16x128xf32> -> vector<16x128xf32>
      %c0_93 = arith.constant 0 : index
      %c0_94 = arith.constant 0 : index
      %247 = vector.load %arg4[%c0_93, %c0_94] : memref<16x128xf32, #tpu.memory_space<vmem>>, vector<16x128xf32>
      %248 = arith.addf %246, %247 : vector<16x128xf32>
      %c0_95 = arith.constant 0 : index
      %c0_96 = arith.constant 0 : index
      %249 = vector.load %arg18[%c0_95, %c0_96] : memref<16x128xf32, #tpu.memory_space<vmem>>, vector<16x128xf32>
      tpu.vector_store %arg18[%c0_95, %c0_96], %248 {strides = array<i32>} : memref<16x128xf32, #tpu.memory_space<vmem>>, vector<16x128xf32>,
    } else {
    }
    %c0 = arith.constant 0 : index
    %c0_1 = arith.constant 0 : index
    %3 = vector.load %arg18[%c0, %c0_1] : memref<16x128xf32, #tpu.memory_space<vmem>>, vector<16x128xf32>
    %4 = arith.truncf %3 : vector<16x128xf32> to vector<16x128xbf16>
    %c0_2 = arith.constant 0 : index
    %c0_3 = arith.constant 0 : index
    %c0_4 = arith.constant 0 : index
    %5 = vector.load %arg5[%c0_2, %c0_3, %c0_4] : memref<1x128x384xbf16, #tpu.memory_space<vmem>>, vector<1x128x384xbf16>
    %6 = vector.shape_cast %5 : vector<1x128x384xbf16> to vector<128x384xbf16>
    %cst = arith.constant dense<0.000000e+00> : vector<16x384xf32>
    %7 = tpu.matmul %4, %6, %cst {dimension_numbers = #tpu.dot_dimension_numbers<[1], [0], [0], [1], [0, 0, 1, 1], [], []>} : vector<16x128xbf16>, vector<128x384xbf16>, vector<16x384xf32> -> vector<16x384xf32>
    %c0_5 = arith.constant 0 : index
    %c0_6 = arith.constant 0 : index
    %c0_7 = arith.constant 0 : index
    %8 = vector.load %arg6[%c0_5, %c0_6, %c0_7] : memref<1x1x384xf32, #tpu.memory_space<vmem>>, vector<1x1x384xf32>
    %9 = vector.shape_cast %8 : vector<1x1x384xf32> to vector<1x384xf32>
    %10 = vector.broadcast %9 : vector<1x384xf32> to vector<16x384xf32>
    %11 = arith.addf %7, %10 : vector<16x384xf32>
    %12 = vector.extract_strided_slice %11 {offsets = [0, 0], sizes = [16, 128], strides = [1, 1]} : vector<16x384xf32> to vector<16x128xf32>
    %13 = vector.extract_strided_slice %11 {offsets = [0, 128], sizes = [16, 128], strides = [1, 1]} : vector<16x384xf32> to vector<16x128xf32>
    %14 = vector.extract_strided_slice %11 {offsets = [0, 256], sizes = [16, 128], strides = [1, 1]} : vector<16x384xf32> to vector<16x128xf32>
    %15 = vector.extract_strided_slice %12 {offsets = [0, 0], sizes = [16, 16], strides = [1, 1]} : vector<16x128xf32> to vector<16x16xf32>
    %16 = arith.truncf %15 : vector<16x16xf32> to vector<16x16xbf16>
    %17 = vector.extract_strided_slice %13 {offsets = [0, 0], sizes = [16, 16], strides = [1, 1]} : vector<16x128xf32> to vector<16x16xf32>
    %18 = arith.truncf %17 : vector<16x16xf32> to vector<16x16xbf16>
    %19 = vector.extract_strided_slice %14 {offsets = [0, 0], sizes = [16, 16], strides = [1, 1]} : vector<16x128xf32> to vector<16x16xf32>
    %20 = arith.truncf %19 : vector<16x16xf32> to vector<16x16xbf16>
    %cst_8 = arith.constant dense<0.000000e+00> : vector<16x16xf32>
    %21 = tpu.matmul %16, %18, %cst_8 {dimension_numbers = #tpu.dot_dimension_numbers<[1], [1], [0], [0], [0, 0, 1, 0], [], []>} : vector<16x16xbf16>, vector<16x16xbf16>, vector<16x16xf32> -> vector<16x16xf32>
    %cst_9 = arith.constant dense<0xFF800000> : vector<16xf32>
    %22 = vector.multi_reduction <maximumf>, %21, %cst_9 [1] : vector<16x16xf32> to vector<16xf32>
    %23 = vector.shape_cast %22 : vector<16xf32> to vector<16x1xf32>
    %24 = vector.broadcast %23 : vector<16x1xf32> to vector<16x16xf32>
    %25 = arith.subf %21, %24 : vector<16x16xf32>
    %26 = math.exp %25 : vector<16x16xf32>
    %cst_10 = arith.constant dense<0.000000e+00> : vector<16xf32>
    %27 = vector.multi_reduction <add>, %26, %cst_10 [1] : vector<16x16xf32> to vector<16xf32>
    %28 = vector.shape_cast %27 : vector<16xf32> to vector<16x1xf32>
    %29 = vector.broadcast %28 : vector<16x1xf32> to vector<16x16xf32>
    %30 = arith.divf %26, %29 : vector<16x16xf32>
    %31 = arith.truncf %30 : vector<16x16xf32> to vector<16x16xbf16>
    %cst_11 = arith.constant dense<0.000000e+00> : vector<16x16xf32>
    %32 = tpu.matmul %31, %20, %cst_11 {dimension_numbers = #tpu.dot_dimension_numbers<[1], [0], [0], [1], [0, 0, 1, 1], [], []>} : vector<16x16xbf16>, vector<16x16xbf16>, vector<16x16xf32> -> vector<16x16xf32>
    %33 = vector.extract_strided_slice %12 {offsets = [0, 16], sizes = [16, 16], strides = [1, 1]} : vector<16x128xf32> to vector<16x16xf32>
    %34 = arith.truncf %33 : vector<16x16xf32> to vector<16x16xbf16>
    %35 = vector.extract_strided_slice %13 {offsets = [0, 16], sizes = [16, 16], strides = [1, 1]} : vector<16x128xf32> to vector<16x16xf32>
    %36 = arith.truncf %35 : vector<16x16xf32> to vector<16x16xbf16>
    %37 = vector.extract_strided_slice %14 {offsets = [0, 16], sizes = [16, 16], strides = [1, 1]} : vector<16x128xf32> to vector<16x16xf32>
    %38 = arith.truncf %37 : vector<16x16xf32> to vector<16x16xbf16>
    %cst_12 = arith.constant dense<0.000000e+00> : vector<16x16xf32>
    %39 = tpu.matmul %34, %36, %cst_12 {dimension_numbers = #tpu.dot_dimension_numbers<[1], [1], [0], [0], [0, 0, 1, 0], [], []>} : vector<16x16xbf16>, vector<16x16xbf16>, vector<16x16xf32> -> vector<16x16xf32>
    %cst_13 = arith.constant dense<0xFF800000> : vector<16xf32>
    %40 = vector.multi_reduction <maximumf>, %39, %cst_13 [1] : vector<16x16xf32> to vector<16xf32>
    %41 = vector.shape_cast %40 : vector<16xf32> to vector<16x1xf32>
    %42 = vector.broadcast %41 : vector<16x1xf32> to vector<16x16xf32>
    %43 = arith.subf %39, %42 : vector<16x16xf32>
    %44 = math.exp %43 : vector<16x16xf32>
    %cst_14 = arith.constant dense<0.000000e+00> : vector<16xf32>
    %45 = vector.multi_reduction <add>, %44, %cst_14 [1] : vector<16x16xf32> to vector<16xf32>
    %46 = vector.shape_cast %45 : vector<16xf32> to vector<16x1xf32>
    %47 = vector.broadcast %46 : vector<16x1xf32> to vector<16x16xf32>
    %48 = arith.divf %44, %47 : vector<16x16xf32>
    %49 = arith.truncf %48 : vector<16x16xf32> to vector<16x16xbf16>
    %cst_15 = arith.constant dense<0.000000e+00> : vector<16x16xf32>
    %50 = tpu.matmul %49, %38, %cst_15 {dimension_numbers = #tpu.dot_dimension_numbers<[1], [0], [0], [1], [0, 0, 1, 1], [], []>} : vector<16x16xbf16>, vector<16x16xbf16>, vector<16x16xf32> -> vector<16x16xf32>
    %51 = vector.extract_strided_slice %12 {offsets = [0, 32], sizes = [16, 16], strides = [1, 1]} : vector<16x128xf32> to vector<16x16xf32>
    %52 = arith.truncf %51 : vector<16x16xf32> to vector<16x16xbf16>
    %53 = vector.extract_strided_slice %13 {offsets = [0, 32], sizes = [16, 16], strides = [1, 1]} : vector<16x128xf32> to vector<16x16xf32>
    %54 = arith.truncf %53 : vector<16x16xf32> to vector<16x16xbf16>
    %55 = vector.extract_strided_slice %14 {offsets = [0, 32], sizes = [16, 16], strides = [1, 1]} : vector<16x128xf32> to vector<16x16xf32>
    %56 = arith.truncf %55 : vector<16x16xf32> to vector<16x16xbf16>
    %cst_16 = arith.constant dense<0.000000e+00> : vector<16x16xf32>
    %57 = tpu.matmul %52, %54, %cst_16 {dimension_numbers = #tpu.dot_dimension_numbers<[1], [1], [0], [0], [0, 0, 1, 0], [], []>} : vector<16x16xbf16>, vector<16x16xbf16>, vector<16x16xf32> -> vector<16x16xf32>
    %cst_17 = arith.constant dense<0xFF800000> : vector<16xf32>
    %58 = vector.multi_reduction <maximumf>, %57, %cst_17 [1] : vector<16x16xf32> to vector<16xf32>
    %59 = vector.shape_cast %58 : vector<16xf32> to vector<16x1xf32>
    %60 = vector.broadcast %59 : vector<16x1xf32> to vector<16x16xf32>
    %61 = arith.subf %57, %60 : vector<16x16xf32>
    %62 = math.exp %61 : vector<16x16xf32>
    %cst_18 = arith.constant dense<0.000000e+00> : vector<16xf32>
    %63 = vector.multi_reduction <add>, %62, %cst_18 [1] : vector<16x16xf32> to vector<16xf32>
    %64 = vector.shape_cast %63 : vector<16xf32> to vector<16x1xf32>
    %65 = vector.broadcast %64 : vector<16x1xf32> to vector<16x16xf32>
    %66 = arith.divf %62, %65 : vector<16x16xf32>
    %67 = arith.truncf %66 : vector<16x16xf32> to vector<16x16xbf16>
    %cst_19 = arith.constant dense<0.000000e+00> : vector<16x16xf32>
    %68 = tpu.matmul %67, %56, %cst_19 {dimension_numbers = #tpu.dot_dimension_numbers<[1], [0], [0], [1], [0, 0, 1, 1], [], []>} : vector<16x16xbf16>, vector<16x16xbf16>, vector<16x16xf32> -> vector<16x16xf32>
    %69 = vector.extract_strided_slice %12 {offsets = [0, 48], sizes = [16, 16], strides = [1, 1]} : vector<16x128xf32> to vector<16x16xf32>
    %70 = arith.truncf %69 : vector<16x16xf32> to vector<16x16xbf16>
    %71 = vector.extract_strided_slice %13 {offsets = [0, 48], sizes = [16, 16], strides = [1, 1]} : vector<16x128xf32> to vector<16x16xf32>
    %72 = arith.truncf %71 : vector<16x16xf32> to vector<16x16xbf16>
    %73 = vector.extract_strided_slice %14 {offsets = [0, 48], sizes = [16, 16], strides = [1, 1]} : vector<16x128xf32> to vector<16x16xf32>
    %74 = arith.truncf %73 : vector<16x16xf32> to vector<16x16xbf16>
    %cst_20 = arith.constant dense<0.000000e+00> : vector<16x16xf32>
    %75 = tpu.matmul %70, %72, %cst_20 {dimension_numbers = #tpu.dot_dimension_numbers<[1], [1], [0], [0], [0, 0, 1, 0], [], []>} : vector<16x16xbf16>, vector<16x16xbf16>, vector<16x16xf32> -> vector<16x16xf32>
    %cst_21 = arith.constant dense<0xFF800000> : vector<16xf32>
    %76 = vector.multi_reduction <maximumf>, %75, %cst_21 [1] : vector<16x16xf32> to vector<16xf32>
    %77 = vector.shape_cast %76 : vector<16xf32> to vector<16x1xf32>
    %78 = vector.broadcast %77 : vector<16x1xf32> to vector<16x16xf32>
    %79 = arith.subf %75, %78 : vector<16x16xf32>
    %80 = math.exp %79 : vector<16x16xf32>
    %cst_22 = arith.constant dense<0.000000e+00> : vector<16xf32>
    %81 = vector.multi_reduction <add>, %80, %cst_22 [1] : vector<16x16xf32> to vector<16xf32>
    %82 = vector.shape_cast %81 : vector<16xf32> to vector<16x1xf32>
    %83 = vector.broadcast %82 : vector<16x1xf32> to vector<16x16xf32>
    %84 = arith.divf %80, %83 : vector<16x16xf32>
    %85 = arith.truncf %84 : vector<16x16xf32> to vector<16x16xbf16>
    %cst_23 = arith.constant dense<0.000000e+00> : vector<16x16xf32>
    %86 = tpu.matmul %85, %74, %cst_23 {dimension_numbers = #tpu.dot_dimension_numbers<[1], [0], [0], [1], [0, 0, 1, 1], [], []>} : vector<16x16xbf16>, vector<16x16xbf16>, vector<16x16xf32> -> vector<16x16xf32>
    %87 = vector.extract_strided_slice %12 {offsets = [0, 64], sizes = [16, 16], strides = [1, 1]} : vector<16x128xf32> to vector<16x16xf32>
    %88 = arith.truncf %87 : vector<16x16xf32> to vector<16x16xbf16>
    %89 = vector.extract_strided_slice %13 {offsets = [0, 64], sizes = [16, 16], strides = [1, 1]} : vector<16x128xf32> to vector<16x16xf32>
    %90 = arith.truncf %89 : vector<16x16xf32> to vector<16x16xbf16>
    %91 = vector.extract_strided_slice %14 {offsets = [0, 64], sizes = [16, 16], strides = [1, 1]} : vector<16x128xf32> to vector<16x16xf32>
    %92 = arith.truncf %91 : vector<16x16xf32> to vector<16x16xbf16>
    %cst_24 = arith.constant dense<0.000000e+00> : vector<16x16xf32>
    %93 = tpu.matmul %88, %90, %cst_24 {dimension_numbers = #tpu.dot_dimension_numbers<[1], [1], [0], [0], [0, 0, 1, 0], [], []>} : vector<16x16xbf16>, vector<16x16xbf16>, vector<16x16xf32> -> vector<16x16xf32>
    %cst_25 = arith.constant dense<0xFF800000> : vector<16xf32>
    %94 = vector.multi_reduction <maximumf>, %93, %cst_25 [1] : vector<16x16xf32> to vector<16xf32>
    %95 = vector.shape_cast %94 : vector<16xf32> to vector<16x1xf32>
    %96 = vector.broadcast %95 : vector<16x1xf32> to vector<16x16xf32>
    %97 = arith.subf %93, %96 : vector<16x16xf32>
    %98 = math.exp %97 : vector<16x16xf32>
    %cst_26 = arith.constant dense<0.000000e+00> : vector<16xf32>
    %99 = vector.multi_reduction <add>, %98, %cst_26 [1] : vector<16x16xf32> to vector<16xf32>
    %100 = vector.shape_cast %99 : vector<16xf32> to vector<16x1xf32>
    %101 = vector.broadcast %100 : vector<16x1xf32> to vector<16x16xf32>
    %102 = arith.divf %98, %101 : vector<16x16xf32>
    %103 = arith.truncf %102 : vector<16x16xf32> to vector<16x16xbf16>
    %cst_27 = arith.constant dense<0.000000e+00> : vector<16x16xf32>
    %104 = tpu.matmul %103, %92, %cst_27 {dimension_numbers = #tpu.dot_dimension_numbers<[1], [0], [0], [1], [0, 0, 1, 1], [], []>} : vector<16x16xbf16>, vector<16x16xbf16>, vector<16x16xf32> -> vector<16x16xf32>
    %105 = vector.extract_strided_slice %12 {offsets = [0, 80], sizes = [16, 16], strides = [1, 1]} : vector<16x128xf32> to vector<16x16xf32>
    %106 = arith.truncf %105 : vector<16x16xf32> to vector<16x16xbf16>
    %107 = vector.extract_strided_slice %13 {offsets = [0, 80], sizes = [16, 16], strides = [1, 1]} : vector<16x128xf32> to vector<16x16xf32>
    %108 = arith.truncf %107 : vector<16x16xf32> to vector<16x16xbf16>
    %109 = vector.extract_strided_slice %14 {offsets = [0, 80], sizes = [16, 16], strides = [1, 1]} : vector<16x128xf32> to vector<16x16xf32>
    %110 = arith.truncf %109 : vector<16x16xf32> to vector<16x16xbf16>
    %cst_28 = arith.constant dense<0.000000e+00> : vector<16x16xf32>
    %111 = tpu.matmul %106, %108, %cst_28 {dimension_numbers = #tpu.dot_dimension_numbers<[1], [1], [0], [0], [0, 0, 1, 0], [], []>} : vector<16x16xbf16>, vector<16x16xbf16>, vector<16x16xf32> -> vector<16x16xf32>
    %cst_29 = arith.constant dense<0xFF800000> : vector<16xf32>
    %112 = vector.multi_reduction <maximumf>, %111, %cst_29 [1] : vector<16x16xf32> to vector<16xf32>
    %113 = vector.shape_cast %112 : vector<16xf32> to vector<16x1xf32>
    %114 = vector.broadcast %113 : vector<16x1xf32> to vector<16x16xf32>
    %115 = arith.subf %111, %114 : vector<16x16xf32>
    %116 = math.exp %115 : vector<16x16xf32>
    %cst_30 = arith.constant dense<0.000000e+00> : vector<16xf32>
    %117 = vector.multi_reduction <add>, %116, %cst_30 [1] : vector<16x16xf32> to vector<16xf32>
    %118 = vector.shape_cast %117 : vector<16xf32> to vector<16x1xf32>
    %119 = vector.broadcast %118 : vector<16x1xf32> to vector<16x16xf32>
    %120 = arith.divf %116, %119 : vector<16x16xf32>
    %121 = arith.truncf %120 : vector<16x16xf32> to vector<16x16xbf16>
    %cst_31 = arith.constant dense<0.000000e+00> : vector<16x16xf32>
    %122 = tpu.matmul %121, %110, %cst_31 {dimension_numbers = #tpu.dot_dimension_numbers<[1], [0], [0], [1], [0, 0, 1, 1], [], []>} : vector<16x16xbf16>, vector<16x16xbf16>, vector<16x16xf32> -> vector<16x16xf32>
    %123 = vector.extract_strided_slice %12 {offsets = [0, 96], sizes = [16, 16], strides = [1, 1]} : vector<16x128xf32> to vector<16x16xf32>
    %124 = arith.truncf %123 : vector<16x16xf32> to vector<16x16xbf16>
    %125 = vector.extract_strided_slice %13 {offsets = [0, 96], sizes = [16, 16], strides = [1, 1]} : vector<16x128xf32> to vector<16x16xf32>
    %126 = arith.truncf %125 : vector<16x16xf32> to vector<16x16xbf16>
    %127 = vector.extract_strided_slice %14 {offsets = [0, 96], sizes = [16, 16], strides = [1, 1]} : vector<16x128xf32> to vector<16x16xf32>
    %128 = arith.truncf %127 : vector<16x16xf32> to vector<16x16xbf16>
    %cst_32 = arith.constant dense<0.000000e+00> : vector<16x16xf32>
    %129 = tpu.matmul %124, %126, %cst_32 {dimension_numbers = #tpu.dot_dimension_numbers<[1], [1], [0], [0], [0, 0, 1, 0], [], []>} : vector<16x16xbf16>, vector<16x16xbf16>, vector<16x16xf32> -> vector<16x16xf32>
    %cst_33 = arith.constant dense<0xFF800000> : vector<16xf32>
    %130 = vector.multi_reduction <maximumf>, %129, %cst_33 [1] : vector<16x16xf32> to vector<16xf32>
    %131 = vector.shape_cast %130 : vector<16xf32> to vector<16x1xf32>
    %132 = vector.broadcast %131 : vector<16x1xf32> to vector<16x16xf32>
    %133 = arith.subf %129, %132 : vector<16x16xf32>
    %134 = math.exp %133 : vector<16x16xf32>
    %cst_34 = arith.constant dense<0.000000e+00> : vector<16xf32>
    %135 = vector.multi_reduction <add>, %134, %cst_34 [1] : vector<16x16xf32> to vector<16xf32>
    %136 = vector.shape_cast %135 : vector<16xf32> to vector<16x1xf32>
    %137 = vector.broadcast %136 : vector<16x1xf32> to vector<16x16xf32>
    %138 = arith.divf %134, %137 : vector<16x16xf32>
    %139 = arith.truncf %138 : vector<16x16xf32> to vector<16x16xbf16>
    %cst_35 = arith.constant dense<0.000000e+00> : vector<16x16xf32>
    %140 = tpu.matmul %139, %128, %cst_35 {dimension_numbers = #tpu.dot_dimension_numbers<[1], [0], [0], [1], [0, 0, 1, 1], [], []>} : vector<16x16xbf16>, vector<16x16xbf16>, vector<16x16xf32> -> vector<16x16xf32>
    %141 = vector.extract_strided_slice %12 {offsets = [0, 112], sizes = [16, 16], strides = [1, 1]} : vector<16x128xf32> to vector<16x16xf32>
    %142 = arith.truncf %141 : vector<16x16xf32> to vector<16x16xbf16>
    %143 = vector.extract_strided_slice %13 {offsets = [0, 112], sizes = [16, 16], strides = [1, 1]} : vector<16x128xf32> to vector<16x16xf32>
    %144 = arith.truncf %143 : vector<16x16xf32> to vector<16x16xbf16>
    %145 = vector.extract_strided_slice %14 {offsets = [0, 112], sizes = [16, 16], strides = [1, 1]} : vector<16x128xf32> to vector<16x16xf32>
    %146 = arith.truncf %145 : vector<16x16xf32> to vector<16x16xbf16>
    %cst_36 = arith.constant dense<0.000000e+00> : vector<16x16xf32>
    %147 = tpu.matmul %142, %144, %cst_36 {dimension_numbers = #tpu.dot_dimension_numbers<[1], [1], [0], [0], [0, 0, 1, 0], [], []>} : vector<16x16xbf16>, vector<16x16xbf16>, vector<16x16xf32> -> vector<16x16xf32>
    %cst_37 = arith.constant dense<0xFF800000> : vector<16xf32>
    %148 = vector.multi_reduction <maximumf>, %147, %cst_37 [1] : vector<16x16xf32> to vector<16xf32>
    %149 = vector.shape_cast %148 : vector<16xf32> to vector<16x1xf32>
    %150 = vector.broadcast %149 : vector<16x1xf32> to vector<16x16xf32>
    %151 = arith.subf %147, %150 : vector<16x16xf32>
    %152 = math.exp %151 : vector<16x16xf32>
    %cst_38 = arith.constant dense<0.000000e+00> : vector<16xf32>
    %153 = vector.multi_reduction <add>, %152, %cst_38 [1] : vector<16x16xf32> to vector<16xf32>
    %154 = vector.shape_cast %153 : vector<16xf32> to vector<16x1xf32>
    %155 = vector.broadcast %154 : vector<16x1xf32> to vector<16x16xf32>
    %156 = arith.divf %152, %155 : vector<16x16xf32>
    %157 = arith.truncf %156 : vector<16x16xf32> to vector<16x16xbf16>
    %cst_39 = arith.constant dense<0.000000e+00> : vector<16x16xf32>
    %158 = tpu.matmul %157, %146, %cst_39 {dimension_numbers = #tpu.dot_dimension_numbers<[1], [0], [0], [1], [0, 0, 1, 1], [], []>} : vector<16x16xbf16>, vector<16x16xbf16>, vector<16x16xf32> -> vector<16x16xf32>
    %159 = tpu.concatenate %32, %50, %68, %86, %104, %122, %140, %158 in 1 : vector<16x16xf32>, vector<16x16xf32>, vector<16x16xf32>, vector<16x16xf32>, vector<16x16xf32>, vector<16x16xf32>, vector<16x16xf32>, vector<16x16xf32> -> vector<16x128xf32>
    %160 = arith.truncf %159 : vector<16x128xf32> to vector<16x128xbf16>
    %c0_40 = arith.constant 0 : index
    %c0_41 = arith.constant 0 : index
    %c0_42 = arith.constant 0 : index
    %161 = vector.load %arg7[%c0_40, %c0_41, %c0_42] : memref<1x128x128xbf16, #tpu.memory_space<vmem>>, vector<1x128x128xbf16>
    %162 = vector.shape_cast %161 : vector<1x128x128xbf16> to vector<128x128xbf16>
    %cst_43 = arith.constant dense<0.000000e+00> : vector<16x128xf32>
    %163 = tpu.matmul %160, %162, %cst_43 {dimension_numbers = #tpu.dot_dimension_numbers<[1], [0], [0], [1], [0, 0, 1, 1], [], []>} : vector<16x128xbf16>, vector<128x128xbf16>, vector<16x128xf32> -> vector<16x128xf32>
    %c0_44 = arith.constant 0 : index
    %c0_45 = arith.constant 0 : index
    %c0_46 = arith.constant 0 : index
    %164 = vector.load %arg8[%c0_44, %c0_45, %c0_46] : memref<1x1x128xf32, #tpu.memory_space<vmem>>, vector<1x1x128xf32>
    %165 = vector.shape_cast %164 : vector<1x1x128xf32> to vector<1x128xf32>
    %166 = vector.broadcast %165 : vector<1x128xf32> to vector<16x128xf32>
    %167 = arith.addf %163, %166 : vector<16x128xf32>
    %c0_47 = arith.constant 0 : index
    %c0_48 = arith.constant 0 : index
    %c0_49 = arith.constant 0 : index
    %168 = vector.load %arg9[%c0_47, %c0_48, %c0_49] : memref<1x1x128xf32, #tpu.memory_space<vmem>>, vector<1x1x128xf32>
    %169 = vector.shape_cast %168 : vector<1x1x128xf32> to vector<1x128xf32>
    %c0_50 = arith.constant 0 : index
    %c0_51 = arith.constant 0 : index
    %c0_52 = arith.constant 0 : index
    %170 = vector.load %arg10[%c0_50, %c0_51, %c0_52] : memref<1x1x128xf32, #tpu.memory_space<vmem>>, vector<1x1x128xf32>
    %171 = vector.shape_cast %170 : vector<1x1x128xf32> to vector<1x128xf32>
    %cst_53 = arith.constant dense<0.000000e+00> : vector<16xf32>
    %172 = vector.multi_reduction <add>, %167, %cst_53 [1] : vector<16x128xf32> to vector<16xf32>
    %173 = vector.shape_cast %172 : vector<16xf32> to vector<16x1xf32>
    %cst_54 = arith.constant 1.280000e+02 : f32
    %174 = vector.broadcast %cst_54 : f32 to vector<16x1xf32>
    %175 = arith.divf %173, %174 : vector<16x1xf32>
    %176 = vector.broadcast %175 : vector<16x1xf32> to vector<16x128xf32>
    %177 = arith.subf %167, %176 : vector<16x128xf32>
    %178 = arith.mulf %177, %177 : vector<16x128xf32>
    %cst_55 = arith.constant dense<0.000000e+00> : vector<16xf32>
    %179 = vector.multi_reduction <add>, %178, %cst_55 [1] : vector<16x128xf32> to vector<16xf32>
    %180 = vector.shape_cast %179 : vector<16xf32> to vector<16x1xf32>
    %cst_56 = arith.constant 1.280000e+02 : f32
    %181 = vector.broadcast %cst_56 : f32 to vector<16x1xf32>
    %182 = arith.divf %180, %181 : vector<16x1xf32>
    %183 = vector.broadcast %175 : vector<16x1xf32> to vector<16x128xf32>
    %184 = arith.subf %167, %183 : vector<16x128xf32>
    %cst_57 = arith.constant 9.99999974E-6 : f32
    %185 = vector.broadcast %cst_57 : f32 to vector<16x1xf32>
    %186 = arith.addf %182, %185 : vector<16x1xf32>
    %187 = math.rsqrt %186 : vector<16x1xf32>
    %188 = vector.broadcast %187 : vector<16x1xf32> to vector<16x128xf32>
    %189 = arith.mulf %184, %188 : vector<16x128xf32>
    %190 = vector.broadcast %169 : vector<1x128xf32> to vector<16x128xf32>
    %191 = arith.mulf %189, %190 : vector<16x128xf32>
    %192 = vector.broadcast %171 : vector<1x128xf32> to vector<16x128xf32>
    %193 = arith.addf %191, %192 : vector<16x128xf32>
    %194 = arith.truncf %193 : vector<16x128xf32> to vector<16x128xbf16>
    %c0_58 = arith.constant 0 : index
    %c0_59 = arith.constant 0 : index
    %c0_60 = arith.constant 0 : index
    %195 = vector.load %arg11[%c0_58, %c0_59, %c0_60] : memref<1x128x256xbf16, #tpu.memory_space<vmem>>, vector<1x128x256xbf16>
    %196 = vector.shape_cast %195 : vector<1x128x256xbf16> to vector<128x256xbf16>
    %cst_61 = arith.constant dense<0.000000e+00> : vector<16x256xf32>
    %197 = tpu.matmul %194, %196, %cst_61 {dimension_numbers = #tpu.dot_dimension_numbers<[1], [0], [0], [1], [0, 0, 1, 1], [], []>} : vector<16x128xbf16>, vector<128x256xbf16>, vector<16x256xf32> -> vector<16x256xf32>
    %c0_62 = arith.constant 0 : index
    %c0_63 = arith.constant 0 : index
    %c0_64 = arith.constant 0 : index
    %198 = vector.load %arg12[%c0_62, %c0_63, %c0_64] : memref<1x1x256xf32, #tpu.memory_space<vmem>>, vector<1x1x256xf32>
    %199 = vector.shape_cast %198 : vector<1x1x256xf32> to vector<1x256xf32>
    %200 = vector.broadcast %199 : vector<1x256xf32> to vector<16x256xf32>
    %201 = arith.addf %197, %200 : vector<16x256xf32>
    %cst_65 = arith.constant 0.000000e+00 : f32
    %202 = vector.broadcast %cst_65 : f32 to vector<16x256xf32>
    %203 = arith.maximumf %201, %202 : vector<16x256xf32>
    %204 = arith.truncf %203 : vector<16x256xf32> to vector<16x256xbf16>
    %c0_66 = arith.constant 0 : index
    %c0_67 = arith.constant 0 : index
    %c0_68 = arith.constant 0 : index
    %205 = vector.load %arg13[%c0_66, %c0_67, %c0_68] : memref<1x256x128xbf16, #tpu.memory_space<vmem>>, vector<1x256x128xbf16>
    %206 = vector.shape_cast %205 : vector<1x256x128xbf16> to vector<256x128xbf16>
    %cst_69 = arith.constant dense<0.000000e+00> : vector<16x128xf32>
    %207 = tpu.matmul %204, %206, %cst_69 {dimension_numbers = #tpu.dot_dimension_numbers<[1], [0], [0], [1], [0, 0, 1, 1], [], []>} : vector<16x256xbf16>, vector<256x128xbf16>, vector<16x128xf32> -> vector<16x128xf32>
    %c0_70 = arith.constant 0 : index
    %c0_71 = arith.constant 0 : index
    %c0_72 = arith.constant 0 : index
    %208 = vector.load %arg14[%c0_70, %c0_71, %c0_72] : memref<1x1x128xf32, #tpu.memory_space<vmem>>, vector<1x1x128xf32>
    %209 = vector.shape_cast %208 : vector<1x1x128xf32> to vector<1x128xf32>
    %210 = vector.broadcast %209 : vector<1x128xf32> to vector<16x128xf32>
    %211 = arith.addf %207, %210 : vector<16x128xf32>
    %c0_73 = arith.constant 0 : index
    %c0_74 = arith.constant 0 : index
    %c0_75 = arith.constant 0 : index
    %212 = vector.load %arg15[%c0_73, %c0_74, %c0_75] : memref<1x1x128xf32, #tpu.memory_space<vmem>>, vector<1x1x128xf32>
    %213 = vector.shape_cast %212 : vector<1x1x128xf32> to vector<1x128xf32>
    %c0_76 = arith.constant 0 : index
    %c0_77 = arith.constant 0 : index
    %c0_78 = arith.constant 0 : index
    %214 = vector.load %arg16[%c0_76, %c0_77, %c0_78] : memref<1x1x128xf32, #tpu.memory_space<vmem>>, vector<1x1x128xf32>
    %215 = vector.shape_cast %214 : vector<1x1x128xf32> to vector<1x128xf32>
    %cst_79 = arith.constant dense<0.000000e+00> : vector<16xf32>
    %216 = vector.multi_reduction <add>, %211, %cst_79 [1] : vector<16x128xf32> to vector<16xf32>
    %217 = vector.shape_cast %216 : vector<16xf32> to vector<16x1xf32>
    %cst_80 = arith.constant 1.280000e+02 : f32
    %218 = vector.broadcast %cst_80 : f32 to vector<16x1xf32>
    %219 = arith.divf %217, %218 : vector<16x1xf32>
    %220 = vector.broadcast %219 : vector<16x1xf32> to vector<16x128xf32>
    %221 = arith.subf %211, %220 : vector<16x128xf32>
    %222 = arith.mulf %221, %221 : vector<16x128xf32>
    %cst_81 = arith.constant dense<0.000000e+00> : vector<16xf32>
    %223 = vector.multi_reduction <add>, %222, %cst_81 [1] : vector<16x128xf32> to vector<16xf32>
    %224 = vector.shape_cast %223 : vector<16xf32> to vector<16x1xf32>
    %cst_82 = arith.constant 1.280000e+02 : f32
    %225 = vector.broadcast %cst_82 : f32 to vector<16x1xf32>
    %226 = arith.divf %224, %225 : vector<16x1xf32>
    %227 = vector.broadcast %219 : vector<16x1xf32> to vector<16x128xf32>
    %228 = arith.subf %211, %227 : vector<16x128xf32>
    %cst_83 = arith.constant 9.99999974E-6 : f32
    %229 = vector.broadcast %cst_83 : f32 to vector<16x1xf32>
    %230 = arith.addf %226, %229 : vector<16x1xf32>
    %231 = math.rsqrt %230 : vector<16x1xf32>
    %232 = vector.broadcast %231 : vector<16x1xf32> to vector<16x128xf32>
    %233 = arith.mulf %228, %232 : vector<16x128xf32>
    %234 = vector.broadcast %213 : vector<1x128xf32> to vector<16x128xf32>
    %235 = arith.mulf %233, %234 : vector<16x128xf32>
    %236 = vector.broadcast %215 : vector<1x128xf32> to vector<16x128xf32>
    %237 = arith.addf %235, %236 : vector<16x128xf32>
    %238 = arith.addf %237, %193 : vector<16x128xf32>
    %c0_84 = arith.constant 0 : index
    %c0_85 = arith.constant 0 : index
    %239 = vector.load %arg18[%c0_84, %c0_85] : memref<16x128xf32, #tpu.memory_space<vmem>>, vector<16x128xf32>
    tpu.vector_store %arg18[%c0_84, %c0_85], %238 {strides = array<i32>} : memref<16x128xf32, #tpu.memory_space<vmem>>, vector<16x128xf32>,
    %c1_i32 = arith.constant 1 : i32
    %240 = arith.cmpi eq, %arg1, %c1_i32 : i32
    %241 = arith.extui %240 : i1 to i32
    %c0_i32_86 = arith.constant 0 : i32
    %242 = arith.cmpi ne, %241, %c0_i32_86 : i32
    scf.if %242 {
      %cst_87 = arith.constant dense<0.000000e+00> : vector<128xf32>
      %243 = vector.multi_reduction <add>, %238, %cst_87 [0] : vector<16x128xf32> to vector<128xf32>
      %244 = vector.shape_cast %243 : vector<128xf32> to vector<1x128xf32>
      %cst_88 = arith.constant 1.600000e+01 : f32
      %245 = vector.broadcast %cst_88 : f32 to vector<1x128xf32>
      %246 = arith.divf %244, %245 : vector<1x128xf32>
      %c0_89 = arith.constant 0 : index
      %c0_90 = arith.constant 0 : index
      %c0_91 = arith.constant 0 : index
      %247 = vector.load %arg17[%c0_89, %c0_90, %c0_91] : memref<1x1x128xf32, #tpu.memory_space<vmem>>, vector<1x1x128xf32>
      %248 = vector.shape_cast %247 : vector<1x1x128xf32> to vector<1x128xf32>
      %249 = vector.shape_cast %246 : vector<1x128xf32> to vector<1x1x128xf32>
      tpu.vector_store %arg17[%c0_89, %c0_90, %c0_91], %249 {strides = array<i32>} : memref<1x1x128xf32, #tpu.memory_space<vmem>>, vector<1x1x128xf32>,
    } else {
    }
    return
  }
  func.func @transform_0(%arg0: i32, %arg1: i32) -> (i32, i32, i32) {
    %c0_i32 = arith.constant 0 : i32
    %c0_i32_0 = arith.constant 0 : i32
    %c0_i32_1 = arith.constant 0 : i32
    return %arg0, %c0_i32, %c0_i32_0 : i32, i32, i32
  }
  func.func @transform_1(%arg0: i32, %arg1: i32) -> (i32, i32) {
    %c0_i32 = arith.constant 0 : i32
    %c0_i32_0 = arith.constant 0 : i32
    %c0_i32_1 = arith.constant 0 : i32
    return %c0_i32, %c0_i32_0 : i32, i32
  }
  func.func @transform_2(%arg0: i32, %arg1: i32) -> (i32, i32) {
    %c0_i32 = arith.constant 0 : i32
    %c0_i32_0 = arith.constant 0 : i32
    %c0_i32_1 = arith.constant 0 : i32
    return %c0_i32, %c0_i32_0 : i32, i32
  }
  func.func @transform_3(%arg0: i32, %arg1: i32) -> (i32, i32, i32) {
    %c0_i32 = arith.constant 0 : i32
    %c0_i32_0 = arith.constant 0 : i32
    %c0_i32_1 = arith.constant 0 : i32
    return %arg1, %c0_i32, %c0_i32_0 : i32, i32, i32
  }
  func.func @transform_4(%arg0: i32, %arg1: i32) -> (i32, i32, i32) {
    %c0_i32 = arith.constant 0 : i32
    %c0_i32_0 = arith.constant 0 : i32
    %c0_i32_1 = arith.constant 0 : i32
    return %arg1, %c0_i32, %c0_i32_0 : i32, i32, i32
  }
  func.func @transform_5(%arg0: i32, %arg1: i32) -> (i32, i32, i32) {
    %c0_i32 = arith.constant 0 : i32
    %c0_i32_0 = arith.constant 0 : i32
    %c0_i32_1 = arith.constant 0 : i32
    return %arg1, %c0_i32, %c0_i32_0 : i32, i32, i32
  }
  func.func @transform_6(%arg0: i32, %arg1: i32) -> (i32, i32, i32) {
    %c0_i32 = arith.constant 0 : i32
    %c0_i32_0 = arith.constant 0 : i32
    %c0_i32_1 = arith.constant 0 : i32
    return %arg1, %c0_i32, %c0_i32_0 : i32, i32, i32
  }
  func.func @transform_7(%arg0: i32, %arg1: i32) -> (i32, i32, i32) {
    %c0_i32 = arith.constant 0 : i32
    %c0_i32_0 = arith.constant 0 : i32
    %c0_i32_1 = arith.constant 0 : i32
    return %arg1, %c0_i32, %c0_i32_0 : i32, i32, i32
  }
  func.func @transform_8(%arg0: i32, %arg1: i32) -> (i32, i32, i32) {
    %c0_i32 = arith.constant 0 : i32
    %c0_i32_0 = arith.constant 0 : i32
    %c0_i32_1 = arith.constant 0 : i32
    return %arg1, %c0_i32, %c0_i32_0 : i32, i32, i32
  }
  func.func @transform_9(%arg0: i32, %arg1: i32) -> (i32, i32, i32) {
    %c0_i32 = arith.constant 0 : i32
    %c0_i32_0 = arith.constant 0 : i32
    %c0_i32_1 = arith.constant 0 : i32
    return %arg1, %c0_i32, %c0_i32_0 : i32, i32, i32
  }
  func.func @transform_10(%arg0: i32, %arg1: i32) -> (i32, i32, i32) {
    %c0_i32 = arith.constant 0 : i32
    %c0_i32_0 = arith.constant 0 : i32
    %c0_i32_1 = arith.constant 0 : i32
    return %arg1, %c0_i32, %c0_i32_0 : i32, i32, i32
  }
  func.func @transform_11(%arg0: i32, %arg1: i32) -> (i32, i32, i32) {
    %c0_i32 = arith.constant 0 : i32
    %c0_i32_0 = arith.constant 0 : i32
    %c0_i32_1 = arith.constant 0 : i32
    return %arg1, %c0_i32, %c0_i32_0 : i32, i32, i32
  }
  func.func @transform_12(%arg0: i32, %arg1: i32) -> (i32, i32, i32) {
    %c0_i32 = arith.constant 0 : i32
    %c0_i32_0 = arith.constant 0 : i32
    %c0_i32_1 = arith.constant 0 : i32
    return %arg1, %c0_i32, %c0_i32_0 : i32, i32, i32
  }
  func.func @transform_13(%arg0: i32, %arg1: i32) -> (i32, i32, i32) {
    %c0_i32 = arith.constant 0 : i32
    %c0_i32_0 = arith.constant 0 : i32
    %c0_i32_1 = arith.constant 0 : i32
    return %arg1, %c0_i32, %c0_i32_0 : i32, i32, i32
  }
  func.func @transform_14(%arg0: i32, %arg1: i32) -> (i32, i32, i32) {
    %c0_i32 = arith.constant 0 : i32
    %c0_i32_0 = arith.constant 0 : i32
    %c0_i32_1 = arith.constant 0 : i32
    return %arg1, %c0_i32, %c0_i32_0 : i32, i32, i32
  }
  func.func @transform_15(%arg0: i32, %arg1: i32) -> (i32, i32, i32) {
    %c0_i32 = arith.constant 0 : i32
    %c0_i32_0 = arith.constant 0 : i32
    %c0_i32_1 = arith.constant 0 : i32
    return %arg0, %c0_i32, %c0_i32_0 : i32, i32, i32
  }
}

</mosaic_0001>

<bundles_post_ra>
// kernel: encoder_forward.1
= control target key start
LH: loop header
LB: loop body
LE: loop exit
PB: predicated region body
PF: predicated region fallthrough
CT: control target
= control target key end

     0   :  { %s5140_s0 = inlined_call_operand.vmem [shape: bf16[2,256,16], index: 0, kind: input, shape index: {}]   ;;  %s5141_s1 = inlined_call_operand.hbm [shape: bf16[256,128], index: 1, kind: input, shape index: {}]   ;;  %s5142_s2 = inlined_call_operand.vmem [shape: f32[16,128], index: 2, kind: input, shape index: {}]   ;;  %s5143_s3 = inlined_call_operand.vmem [shape: bf16[2,128,384], index: 3, kind: input, shape index: {}]   ;;  %s5144_s4 = inlined_call_operand.vmem [shape: f32[2,1,384], index: 4, kind: input, shape index: {}]   ;;  %s5145_s5 = inlined_call_operand.hbm [shape: bf16[2,128,128], index: 5, kind: input, shape index: {}]   ;;  %s5146_s6 = inlined_call_operand.vmem [shape: f32[2,1,128], index: 6, kind: input, shape index: {}]   ;;  %s5147_s7 = inlined_call_operand.vmem [shape: f32[2,1,128], index: 7, kind: input, shape index: {}]   ;;  %s5148_s8 = inlined_call_operand.vmem [shape: f32[2,1,128], index: 8, kind: input, shape index: {}]   ;;  %s5149_s9 = inlined_call_operand.hbm [shape: bf16[2,128,256], index: 9, kind: input, shape index: {}]   ;;  %s5150_s10 = inlined_call_operand.vmem [shape: f32[2,1,256], index: 10, kind: input, shape index: {}]   ;;  %s5151_s11 = inlined_call_operand.hbm [shape: bf16[2,256,128], index: 11, kind: input, shape index: {}]   ;;  %s5152_s12 = inlined_call_operand.vmem [shape: f32[2,1,128], index: 12, kind: input, shape index: {}]   ;;  %s5153_s13 = inlined_call_operand.vmem [shape: f32[2,1,128], index: 13, kind: input, shape index: {}]   ;;  %s5154_s14 = inlined_call_operand.vmem [shape: f32[2,1,128], index: 14, kind: input, shape index: {}]   ;;  %s5155_s15 = inlined_call_operand.hbm [shape: f32[2,1,128], index: 15, kind: output, shape index: {}]  }
   0x1   :  { %5185 = sst [smem:[#allocation30_spill]] %s5140_s0 }
   0x2   :  { %5186 = sst [smem:[#allocation31_spill]] %s5141_s1 }
   0x3   :  { %5187 = sst [smem:[#allocation32_spill]] %s5142_s2 }
   0x4   :  { %5188 = sst [smem:[#allocation33_spill]] %s5143_s3 }
   0x5   :  { %5189 = sst [smem:[#allocation34_spill]] %s5144_s4 }
   0x6   :  { %5190 = sst [smem:[#allocation35_spill]] %s5145_s5 }
   0x7   :  { %5191 = sst [smem:[#allocation36_spill]] %s5147_s7 }
   0x8   :  { %5192 = sst [smem:[#allocation37_spill]] %s5148_s8 }
   0x9   :  { %5193 = sst [smem:[#allocation38_spill]] %s5149_s9 }
   0xa   :  { %5194 = sst [smem:[#allocation39_spill]] %s5150_s10 }
   0xb   :  { %5195 = sst [smem:[#allocation40_spill]] %s5151_s11 }
   0xc   :  { %5196 = sst [smem:[#allocation41_spill]] %s5152_s12 }
   0xd   :  { %5197 = sst [smem:[#allocation42_spill]] %s5153_s13 }
   0xe   :  { %5198 = sst [smem:[#allocation43_spill]] %s5154_s14 }
   0xf   :  { %5199 = sst [smem:[#allocation44_spill]] %s5155_s15 }
  0x10   :  { %20 = vsyncpa [#allocation4], 0 }
  0x11   :  { %21 = vsyncpa [#allocation7], 0 }
  0x12   :  { %23 = vsyncpa [#allocation7 + $0x1], 0 }
  0x13   :  { %24 = vsyncpa [#allocation10], 0 }
  0x14   :  { %26 = vsyncpa [#allocation10 + $0x1], 0 }
  0x15   :  { %27 = vsyncpa [#allocation5], 0 }
  0x16   :  { %29 = vsyncpa [#allocation5 + $0x1], 0  ;;  %s4300_s18 = smov 0   ;;  %s4302_s19 = smov 0  }
  0x17   :  { %s4304_s20 = smov 0   ;;  %s4306_s21 = smov 0  }
  0x18   :  { %s4308_s22 = smov 0   ;;  %s4310_s23 = smov 0  }
  0x19   :  { %s4312_s24 = smov 0   ;;  %s4314_s25 = smov 0  }
  0x1a   :  { %s4316_s26 = smov 0   ;;  %s4318_s27 = smov 0  }
  0x1b   :  { %s4320_s28 = smov 0  }
  0x1c LB: > { %5200 = sst [smem:[#allocation16_spill]] %s4159_s18  ;;  %s44_s29 = sadd.s32 1, %s4191_s26  ;;  %s4199_s28 = sphi %s4320_s28, %s35_s28   ;;  %s4195_s27 = sphi %s4318_s27, %s5273_s27   ;;  %s4191_s26 = sphi %s4316_s26, %s5272_s26   ;;  %s4187_s25 = sphi %s4314_s25, %s5271_s25   ;;  %s4183_s24 = sphi %s4312_s24, %s5270_s24   ;;  %s4179_s23 = sphi %s4310_s23, %s5269_s23   ;;  %s4175_s22 = sphi %s4308_s22, %s5268_s22   ;;  %s4171_s21 = sphi %s4306_s21, %s5267_s21   ;;  %s4167_s20 = sphi %s4304_s20, %s5266_s20   ;;  %s4163_s19 = sphi %s4302_s19, %s5275_s19   ;;  %s4159_s18 = sphi %s4300_s18, %s5274_s18  }
  0x1d   : > { %5201 = sst [smem:[#allocation17_spill]] %s4167_s20  ;;  %s47_s30 = sadd.s32 1, %s4195_s27 }
  0x1e   : > { %5202 = sst [smem:[#allocation18_spill]] %s4175_s22  ;;  %p45_p0 = scmp.ge.s32.totalorder %s44_s29, 2 }
  0x1f   : > { %5203 = sst [smem:[#allocation19_spill]] %s4179_s23  ;;  %s174_s16 = sadd.s32 1, %s4179_s23 }
  0x20   : > { %5204 = sst [smem:[#allocation20_spill]] %s4187_s25  ;;  %p181_p1 = scmp.ne.s32.totalorder %s4179_s23, %s4175_s22 }
  0x21   : > { %5205 = sst [smem:[#allocation21_spill]] %s4191_s26  ;;  %p182_p2 = scmp.eq.s32.totalorder %s4199_s28, 0 }
  0x22   : > { %5206 = sst [smem:[#allocation22_spill]] %s4195_s27  ;;  %s5277_s29 = smov (%p45_p0, %s44_s29), 0 }
  0x23   : > { %5207 = sst [smem:[#allocation23_spill]] %s4199_s28  ;;  %s5279_s30 = smov (!%p45_p0, %s47_s30), %s4195_s27 }
  0x24   : > { %5208 = sst [smem:[#allocation24_spill]] %s5277_s29  ;;  %s171_s17 = ssub.s32 %s4191_s26, %s5277_s29 }
  0x25   : > { %p4366_p3 = por %p182_p2, %p181_p1  ;;  %p49_p4 = scmp.ge.s32.totalorder %s5279_s30, 2 }
  0x26   : > { %p172_p5 = scmp.eq.s32.totalorder %s171_s17, 0  ;;  %p3626_p7 = scmp.lt.s32.totalorder %s4199_s28, 4 }
  0x27   : > { %s5281_s30 = smov (%p49_p4, %s5279_s30), 0  ;;  %s510_s10 = sand.u32 1, %s4199_s28  }
  0x28   : > { %5210 = sst [smem:[#allocation25_spill]] %s5281_s30  ;;  %s431_s14 = ssub.s32 %s4195_s27, %s5281_s30 }
  0x29   : > { %s4373_s2 = scalar_select %p172_p5, %s4179_s23, %s174_s16  }
  0x2a   : > { %p4377_p6 = scmp.eq.s32.totalorder %s431_s14, 0  ;;  %s4384_s29 = sand.u32 1, %s4179_s23  }
  0x2b   : > { %5211 = sst [smem:[#allocation26_spill]] %s4373_s2  ;;  %s3218_s12 = sshll.u32 %s4384_s29, 6 }
  0x2c   : > { %s5212_s13 = scalar_select %p4377_p6, 1, 0 }
  0x2d   : > { %s3359_s8 = sshll.u32 %s4191_s26, 10  ;;  %s5213_s5 = sld [smem:[#allocation35_spill]] }
  0x2e   : > { %s514_s14 = scalar_lea.vmem [#allocation6], %s3218_s12  ;;  %p4397_p8 = pnand %p3626_p7, %p4366_p3 }
  0x2f   : > { %s521_s16 = sshll.u32 %s514_s14, 4  ;;  %s4401_s27 = scalar_lea.sflag [#allocation7], %s510_s10  ;;  %s4393_s16 = int_to_ptr.vmem [resolvable:$true] %s521_s16 }
  0x30   : > { %s5214_s30 = scalar_select %p4397_p8, 1, 0 }
  0x31   : > { %p4407_p10 = pneg %p4397_p8 }
  0x33   : > { %s4391_s17 = scalar_lea.hbm %s5213_s5, %s3359_s8  ;;  %s3956_s12 = scalar_lea.hbm %s5213_s5, 2048 }
  0x34   : > { %s3951_s2 = scalar_lea.hbm %s4391_s17, 1024  ;;  %p3957_p13 = scmp.lt.u32.totalorder %s4391_s17, %s5213_s5 }
  0x35   : > { %p3952_p9 = scmp.ne.s32.totalorder %s4391_s17, %s3951_s2  ;;  %p3958_p0 = scmp.lt.u32.totalorder %s3956_s12, %s3951_s2 }
  0x36   : > { %s5215_s4 = scalar_select %p4407_p10, 1, 0 }
  0x37   : > { %p3954_p11 = pnand %p4407_p10, %p3952_p9  ;;  %p3959_p1 = por %p3958_p0, %p3957_p13 }
  0x38   : > { %p3960_p2 = scmp.lt.u32.totalorder %s3951_s2, %s4391_s17 }
  0x39   : > { %p3955_p12 = pneg %p3954_p11 }
  0x3a   : > { %p3961_p3 = por %p3960_p2, %p3959_p1 }
  0x3c   : > { %p3962_p4 = pnand %p3961_p3, %p3955_p12 }
  0x3e   : > { %3965 = shalt.err (!%p3962_p4)
}
  0x3f   : > { %s3966_s10 = scalar_lea.vmem %s4393_s16, 1024  ;;  %s4201_s7 = smov [#allocation6]  }
  0x40   : > { %p3967_p5 = scmp.ne.s32.totalorder %s4393_s16, %s3966_s10  ;;  %s3971_s8 = sshll.u32 %s4201_s7, 4  ;;  %s3972_s8 = int_to_ptr.vmem [resolvable:$false] %s3971_s8 }
  0x41   : > { %s3973_s15 = scalar_lea.vmem %s3972_s8, 2048  ;;  %p3974_p11 = scmp.lt.s32.totalorder %s4393_s16, %s3972_s8 }
  0x42   : > { %p3969_p7 = pnand %p3967_p5, %p4407_p10  ;;  %p3975_p6 = scmp.lt.s32.totalorder %s3973_s15, %s3966_s10 }
  0x44   : > { %p3970_p9 = pneg %p3969_p7  ;;  %p3976_p13 = por %p3975_p6, %p3974_p11 }
  0x46   : > { %p3977_p0 = pnand %p3976_p13, %p3970_p9 }
  0x48   : > { %3980 = shalt.err (!%p3977_p0)
}
  0x49   : > { %s5161_s2 = smov 64   ;;  %s5163_s12 = smov 4  }
  0x4a   : > { %3614 = dma.hbm_to_vmem [thread:$0]  (!%p4397_p8), %s4391_s17, 1024, %s4393_s16, %s4401_s27, %s5161_s2, %s5161_s2, %s5163_s12  }
  0x4b   : > { %s4435_s14 = sadd.s32 4294967295, %s4199_s28   ;;  %s3214_s10 = sadd.s32 4294967294, %s4199_s28  }
  0x4c   : > { %p187_p6 = scmp.ne.s32.totalorder %s4175_s22, %s4171_s21  ;;  %p5173_p12 = scmp.eq.s32.totalorder %s4435_s14, 0 }
  0x4d   : > { %s434_s7 = sadd.s32 1, %s4167_s20  ;;  %p5216_p1 = scmp.ne.s32.totalorder %s5212_s13, 0 }
  0x4e   : > { %p4449_p2 = por %p5173_p12, %p187_p6  ;;  %p444_p3 = scmp.ne.s32.totalorder %s4167_s20, %s4163_s19 }
  0x4f   : > { %s4445_s8 = scalar_select %p5216_p1, %s4167_s20, %s434_s7  }
  0x50   : > { %s5218_s15 = scalar_select %p4449_p2, 1, 0 }
  0x51   : > { %5217 = sst [smem:[#allocation27_spill]] %s4445_s8  ;;  %p445_p4 = scmp.eq.s32.totalorder %s4435_s14, 3 }
  0x52   : > { %p450_p5 = scmp.ne.s32.totalorder %s4163_s19, %s4159_s18  ;;  %p451_p7 = scmp.eq.s32.totalorder %s3214_s10, 3 }
  0x53   : > { %p3215_p9 = scmp.ge.s32.totalorder %s4199_s28, 1  ;;  %p4459_p11 = por %p445_p4, %p444_p3 }
  0x54   : > { %p458_p13 = scmp.lt.s32.totalorder %s4199_s28, 5  ;;  %p4464_p0 = por %p451_p7, %p450_p5 }
  0x55   : > { %s5219_s21 = scalar_select %p4459_p11, 1, 0 }
  0x56   : > { %s5221_s13 = scalar_select %p4464_p0, 1, 0 }
  0x57   : > { %5220 = sst [smem:[#allocation28_spill]] %s5219_s21  ;;  %p4468_p6 = pnand %p3215_p9, %p458_p13 }
  0x58   : > { %5222 = sst [smem:[#allocation29_spill]] %s5221_s13  ;;  %s4204_s16 = smov [#allocation3]  }
  0x59   : > { %s5223_s17 = scalar_select %p4468_p6, 1, 0 }
  0x5a   : > { %s470_s7 = sshll.u32 %s4204_s16, 4  ;;  %s5181_s2 = sshll.u32 %s4384_s29, 7  ;;  %s471_s7 = int_to_ptr.vmem [resolvable:$true] %s470_s7 }
  0x5b   : > { %p3607_p1 = pneg %p4468_p6  ;;  %s3360_s10 = sshll.u32 %s4191_s26, 11 }
  0x5c   : > { %s5225_s9 = sld [smem:[#allocation38_spill]]  ;;  %s553_s20 = scalar_lea.vmem [#allocation8], %s5181_s2 }
  0x5d   : > { %p4478_p3 = pnand %p3607_p1, %p5173_p12  ;;  %s560_s16 = sshll.u32 %s553_s20, 4  ;;  %s4491_s16 = int_to_ptr.vmem [resolvable:$true] %s560_s16 }
  0x5e   : > { %s5226_s1 = sld [smem:[#allocation31_spill]] }
  0x5f   : > { %p3983_p5 = pneg %p4478_p3 }
  0x62   : > { %s4487_s8 = scalar_lea.hbm %s5225_s9, %s3360_s10 }
  0x64   : > { %s3981_s28 = scalar_lea.hbm %s5226_s1, 2048 }
  0x65   : > { %p3982_p4 = scmp.ne.s32.totalorder %s5226_s1, %s3981_s28  ;;  %p3988_p13 = scmp.lt.u32.totalorder %s3981_s28, %s5226_s1 }
  0x67   : > { %p3984_p7 = pnand %p3983_p5, %p3982_p4 }
  0x69   : > { %p3985_p9 = pneg %p3984_p7 }
  0x6b   : > { %p3990_p1 = pnand %p3988_p13, %p3985_p9 }
  0x6d   : > { %3993 = shalt.err (!%p3990_p1)
}
  0x6e   : > { %s3994_s20 = scalar_lea.vmem %s471_s7, 2048  ;;  %p4002_p2 = scmp.lt.s32.totalorder %s471_s7, %s471_s7 }
  0x6f   : > { %p3995_p12 = scmp.ne.s32.totalorder %s471_s7, %s3994_s20  ;;  %p4003_p6 = scmp.lt.s32.totalorder %s3994_s20, %s3994_s20 }
  0x71   : > { %p3997_p0 = pnand %p3995_p12, %p3983_p5  ;;  %p4004_p8 = por %p4003_p6, %p4002_p2 }
  0x73   : > { %p3998_p11 = pneg %p3997_p0 }
  0x75   : > { %p4005_p10 = pnand %p4004_p8, %p3998_p11 }
  0x77   : > { %4008 = shalt.err (!%p4005_p10)
}
  0x78   : > { %s5227_s3 = smov 4   ;;  %s5228_s18 = smov 64  }
  0x79   : > { %3610 = dma.hbm_to_vmem [thread:$0]  (!%p4478_p3), %s5226_s1, 2048, %s471_s7, [#allocation4], %s5228_s18, %s5228_s18, %s5227_s3  }
  0x7a   : > { %s4009_s28 = scalar_lea.hbm %s4487_s8, 2048  ;;  %p5229_p0 = scmp.ne.s32.totalorder %s5215_s4, 0 }
  0x7b   : > { %p4010_p12 = scmp.ne.s32.totalorder %s4487_s8, %s4009_s28  ;;  %s4014_s12 = scalar_lea.hbm %s5225_s9, 4096 }
  0x7c   : > { %p4015_p10 = scmp.lt.u32.totalorder %s4487_s8, %s5225_s9  ;;  %p4016_p11 = scmp.lt.u32.totalorder %s4014_s12, %s4009_s28 }
  0x7d   : > { %p4012_p2 = pnand %p4010_p12, %p5229_p0  ;;  %p4018_p4 = scmp.lt.u32.totalorder %s4009_s28, %s4487_s8 }
  0x7e   : > { %p4017_p6 = por %p4016_p11, %p4015_p10 }
  0x7f   : > { %p4013_p8 = pneg %p4012_p2 }
  0x80   : > { %p4019_p5 = por %p4018_p4, %p4017_p6 }
  0x82   : > { %p4020_p7 = pnand %p4019_p5, %p4013_p8 }
  0x84   : > { %4023 = shalt.err (!%p4020_p7)
}
  0x85   : > { %s4024_s7 = scalar_lea.vmem %s4491_s16, 2048  ;;  %s4205_s21 = smov [#allocation8]  }
  0x86   : > { %p4025_p3 = scmp.ne.s32.totalorder %s4491_s16, %s4024_s7  ;;  %s4029_s13 = sshll.u32 %s4205_s21, 4  ;;  %s4030_s13 = int_to_ptr.vmem [resolvable:$false] %s4029_s13 }
  0x87   : > { %s4031_s2 = scalar_lea.vmem %s4030_s13, 4096  ;;  %p4032_p1 = scmp.lt.s32.totalorder %s4491_s16, %s4030_s13 }
  0x88   : > { %p4027_p9 = pnand %p4025_p3, %p5229_p0  ;;  %p4033_p12 = scmp.lt.s32.totalorder %s4031_s2, %s4024_s7 }
  0x8a   : > { %p4028_p13 = pneg %p4027_p9  ;;  %p4034_p2 = por %p4033_p12, %p4032_p1 }
  0x8c   : > { %p4035_p10 = pnand %p4034_p2, %p4028_p13 }
  0x8e   : > { %4038 = shalt.err (!%p4035_p10)
}
  0x8f   : > { %s4206_s28 = smov 128   ;;  %s4207_s5 = smov 8  }
  0x90   : > { %p5230_p8 = scmp.ne.s32.totalorder %s5214_s30, 0  ;;  %s5231_s11 = sld [smem:[#allocation40_spill]] }
  0x91   : > { %s5232_s7 = sshll.u32 %s4384_s29, 7  ;;  %s578_s2 = scalar_lea.sflag [#allocation10], %s4384_s29 }
  0x92   : > { %3617 = dma.hbm_to_vmem [thread:$0]  (!%p5230_p8), %s4487_s8, 2048, %s4491_s16, %s4401_s27, %s4206_s28, %s4206_s28, %s4207_s5  }
  0x93   : > { %s581_s21 = scalar_lea.vmem [#allocation9], %s5232_s7 }
  0x94   : > { %s588_s13 = sshll.u32 %s581_s21, 4  ;;  %s4543_s13 = int_to_ptr.vmem [resolvable:$true] %s588_s13 }
  0x96   : > { %s4539_s20 = scalar_lea.hbm %s5231_s11, %s3360_s10  ;;  %s4044_s10 = scalar_lea.hbm %s5231_s11, 4096 }
  0x97   : > { %s4039_s1 = scalar_lea.hbm %s4539_s20, 2048  ;;  %p4045_p5 = scmp.lt.u32.totalorder %s4539_s20, %s5231_s11 }
  0x98   : > { %p4040_p11 = scmp.ne.s32.totalorder %s4539_s20, %s4039_s1  ;;  %p4046_p7 = scmp.lt.u32.totalorder %s4044_s10, %s4039_s1 }
  0x99   : > { %p4048_p9 = scmp.lt.u32.totalorder %s4039_s1, %s4539_s20 }
  0x9a   : > { %p4042_p6 = pnand %p4040_p11, %p5229_p0  ;;  %p4047_p3 = por %p4046_p7, %p4045_p5 }
  0x9c   : > { %p4043_p4 = pneg %p4042_p6  ;;  %p4049_p13 = por %p4048_p9, %p4047_p3 }
  0x9e   : > { %p4050_p1 = pnand %p4049_p13, %p4043_p4 }
  0xa0   : > { %4053 = shalt.err (!%p4050_p1)
}
  0xa1   : > { %s4054_s5 = scalar_lea.vmem %s4543_s13, 2048  ;;  %s4208_s23 = smov [#allocation9]  }
  0xa2   : > { %p4055_p12 = scmp.ne.s32.totalorder %s4543_s13, %s4054_s5  ;;  %s4059_s12 = sshll.u32 %s4208_s23, 4  ;;  %s4060_s12 = int_to_ptr.vmem [resolvable:$false] %s4059_s12 }
  0xa3   : > { %s4061_s7 = scalar_lea.vmem %s4060_s12, 4096  ;;  %p4062_p11 = scmp.lt.s32.totalorder %s4543_s13, %s4060_s12 }
  0xa4   : > { %p4057_p2 = pnand %p4055_p12, %p5229_p0  ;;  %p4063_p6 = scmp.lt.s32.totalorder %s4061_s7, %s4054_s5 }
  0xa6   : > { %p4058_p10 = pneg %p4057_p2  ;;  %p4064_p5 = por %p4063_p6, %p4062_p11 }
  0xa8   : > { %p4065_p7 = pnand %p4064_p5, %p4058_p10 }
  0xaa   : > { %4068 = shalt.err (!%p4065_p7)
}
  0xab   : > { %3620 = dma.hbm_to_vmem [thread:$0]  (!%p5230_p8), %s4539_s20, 2048, %s4543_s13, %s578_s2, %s5228_s18, %s5228_s18, %s5227_s3  }
  0xac   : > { %p5233_p0 = scmp.ne.s32.totalorder %s5223_s17, 0 }
  0xad   : > { %p5234_p4 = scmp.eq.s32.totalorder (!%p5233_p0), %s4435_s14, 0 }
  0xae   : > { %618 = sbr.rel (%p5233_p0) target bundleno = 3628 (0xe2c), region = 80 }
  0xb5   : > { %4142 = dma.done.wait (%p5234_p4), [#allocation4], 2048   ;;  %p5235_p3 = pmov %p5234_p4 }
  0xb6   : > { %s624_s1 = sand.u32 1, %s4435_s14   ;;  %s626_s30 = sand.u32 1, %s4175_s22  }
  0xb7   : > { %4144 = vsyncadd (%p5235_p3), [#allocation4], 4294965248  ;;  %s3229_s4 = sshll.u32 %s626_s30, 6  ;;  %s625_s21 = scalar_lea.sflag [#allocation7], %s624_s1 }
  0xb8   : > { %s4580_s29 = scalar_lea.vmem [#allocation6], %s3229_s4  ;;  %p5236_p9 = scmp.ne.s32.totalorder %s5218_s15, 0 }
  0xba   : > { %4146 = dma.done.wait (%p5236_p9), %s625_s21, 3072  }
  0xbb   : > { %4148 = vsyncadd (%p5236_p9), %s625_s21, 4294964224  ;;  %s3230_s17 = sshll.u32 %s626_s30, 7  ;;  %s643_s18 = scalar_lea.sflag [#allocation10], %s626_s30 }
  0xbc   : > { %s4586_s3 = scalar_lea.vmem [#allocation8], %s3230_s17  ;;  %s4588_s20 = scalar_lea.vmem [#allocation9], %s3230_s17 }
  0xbd   : > { %4150 = dma.done.wait (%p5236_p9), %s643_s18, 2048  }
  0xbe   : > { %4152 = vsyncadd (%p5236_p9), %s643_s18, 4294965248  ;;  %p738_p8 = scmp.lt.s32.totalorder %s4187_s25, 1  ;;  %p743_p13 = scmp.lt.s32.totalorder %s4183_s24, 1 }
  0xbf   : > { %s5237_s0 = sld [smem:[#allocation30_spill]]  ;;  %s5238_s30 = sld [smem:[#allocation33_spill]] }
  0xc0   : > { %s739_s13 = scalar_select %p738_p8, %s4187_s25, 1 }
  0xc1   : > { %s4599_s2 = scalar_select %p743_p13, %s4183_s24, 1 }
  0xc2   : > { %s3362_s15 = sshll.u32 %s739_s13, 7  ;;  %s5240_s27 = sld [smem:[#allocation34_spill]] }
  0xc3   : > { %s3593_s16 = smul.u32 192, %s4599_s2  ;;  %s5241_s11 = sld [smem:[#allocation37_spill]] }
  0xc4   : > { %s3594_s28 = smul.u32 3, %s4599_s2  ;;  %s3235_s5 = sshll.u32 %s4599_s2, 1 }
  0xc5   : > { %s4604_s10 = scalar_lea.vmem %s5237_s0, %s3362_s15  ;;  %s4615_s4 = scalar_lea.vmem %s5238_s30, %s3593_s16 }
  0xc6   : > { %s5242_s22 = sld [smem:[#allocation41_spill]]  ;;  %s5243_s30 = sld [smem:[#allocation39_spill]] }
  0xc7   : > { %s5244_s18 = sld [smem:[#allocation42_spill]]  ;;  %s5246_s0 = sand.u32 1, %s4163_s19  }
  0xc8   : > { %s4624_s15 = scalar_lea.vmem %s5240_s27, %s3594_s28  ;;  %s5245_s27 = sld [smem:[#allocation43_spill]] }
  0xc9   : > { %s760_s26 = scalar_lea.vmem %s5241_s11, %s4599_s2  ;;  %s4650_s11 = scalar_lea.vmem [#allocation11], %s5246_s0 }
  0xca   : > { %p3236_p1 = scmp.ne.s32.totalorder %s4183_s24, 0 }
  0xcb   : > { %v3732_v0 = vld [vmem:[%s4604_s10 + $0x40] sm:$0xff] (!%p3236_p1)   ;;  %v3734_v2 = vld [vmem:[%s4604_s10 + $0x48] sm:$0xff] (!%p3236_p1)   ;;  %v3736_v4 = vld [vmem:[%s4604_s10 + $0x50] sm:$0xff] (!%p3236_p1)   ;;  %s5247_s12 = sld [smem:[#allocation32_spill]] (!%p3236_p1) }
  0xcc   : > { %s767_s7 = scalar_lea.vmem %s5242_s22, %s4599_s2  ;;  %s4638_s25 = scalar_lea.vmem %s5243_s30, %s3235_s5  ;;  %v3733_v1 = vld [vmem:[%s4604_s10] sm:$0xff] (!%p3236_p1)   ;;  %957 = vxpose.xlu0.c.b16.start [1/8] (narrow) (!%p3236_p1), %v3732_v0, 16  ;;  %v3735_v3 = vld [vmem:[%s4604_s10 + $0x8] sm:$0xff] (!%p3236_p1)   ;;  %v3737_v5 = vld [vmem:[%s4604_s10 + $0x10] sm:$0xff] (!%p3236_p1)  }
  0xcd   : > { %s770_s9 = scalar_lea.vmem %s5244_s18, %s4599_s2  ;;  %778 = sbr.rel (%p3236_p1) target bundleno = 528 (0x210), region = 100  ;;  %941 = vxpose.xlu1.c.b16.start [1/8] (narrow) (!%p3236_p1), %v3733_v1, 16  ;;  %v3738_v6 = vld [vmem:[%s4604_s10 + $0x58] sm:$0xff] (!%p3236_p1)   ;;  %v3740_v8 = vld [vmem:[%s4604_s10 + $0x60] sm:$0xff] (!%p3236_p1)   ;;  %v3742_v10 = vld [vmem:[%s4604_s10 + $0x68] sm:$0xff] (!%p3236_p1)  }
  0xce   : > { %s773_s13 = scalar_lea.vmem %s5245_s27, %s4599_s2  ;;  %v3739_v7 = vld [vmem:[%s4604_s10 + $0x18] sm:$0xff] (!%p3236_p1)   ;;  %v3741_v9 = vld [vmem:[%s4604_s10 + $0x20] sm:$0xff] (!%p3236_p1)   ;;  %v3748_v11 = vld [vmem:[#allocation3 + $0x40] sm:$0xff] (!%p3236_p1)  }
  0xcf   : > { %v3743_v12 = vld [vmem:[%s4604_s10 + $0x28] sm:$0xff] (!%p3236_p1)   ;;  %v3749_v13 = vld [vmem:[#allocation3] sm:$0xff] (!%p3236_p1)   ;;  %3363 = vmatprep.subr.bf16.mxu0 (!%p3236_p1), %v3748_v11  ;;  %v3750_v14 = vld [vmem:[#allocation3 + $0x48] sm:$0xff] (!%p3236_p1)  }
  0xd0   : > { %958 = vxpose.xlu0.c.b16.cont [2/8] (narrow) (!%p3236_p1), %v3734_v2, 16  ;;  %3364 = vmatpush3.bf16.msra.mxu0 (!%p3236_p1), %v3749_v13  ;;  %v3751_v15 = vld [vmem:[#allocation3 + $0x8] sm:$0xff] (!%p3236_p1)   ;;  %v3752_v16 = vld [vmem:[#allocation3 + $0x50] sm:$0xff] (!%p3236_p1)   ;;  %v3744_v17 = vld [vmem:[%s4604_s10 + $0x70] sm:$0xff] (!%p3236_p1)  }
  0xd1   : > { %942 = vxpose.xlu1.c.b16.cont [2/8] (narrow) (!%p3236_p1), %v3735_v3, 16  ;;  %3365 = vmatprep.subr.bf16.mxu0 (!%p3236_p1), %v3750_v14  ;;  %v3745_v18 = vld [vmem:[%s4604_s10 + $0x30] sm:$0xff] (!%p3236_p1)   ;;  %v3753_v19 = vld [vmem:[#allocation3 + $0x10] sm:$0xff] (!%p3236_p1)   ;;  %v3754_v20 = vld [vmem:[#allocation3 + $0x58] sm:$0xff] (!%p3236_p1)  }
  0xd2   : > { %v3746_v21 = vld [vmem:[%s4604_s10 + $0x78] sm:$0xff] (!%p3236_p1)   ;;  %v3755_v23 = vld [vmem:[#allocation3 + $0x18] sm:$0xff] (!%p3236_p1)   ;;  %v3756_v24 = vld [vmem:[#allocation3 + $0x60] sm:$0xff] (!%p3236_p1)  }
  0xd3   : > { %v3747_v22 = vld [vmem:[%s4604_s10 + $0x38] sm:$0xff] (!%p3236_p1)   ;;  %v3757_v25 = vld [vmem:[#allocation3 + $0x20] sm:$0xff] (!%p3236_p1)   ;;  %v3760_v28 = vld [vmem:[#allocation3 + $0x70] sm:$0xff] (!%p3236_p1)  }
  0xd4   : > { %959 = vxpose.xlu0.c.b16.cont [3/8] (narrow) %v3736_v4, 16  ;;  %3366 = vmatpush3.bf16.msra.mxu0 %v3751_v15  ;;  %v3758_v26 = vld [vmem:[#allocation3 + $0x68] sm:$0xff]   ;;  %v3761_v29 = vld [vmem:[#allocation3 + $0x30] sm:$0xff]   ;;  %v3762_v30 = vld [vmem:[#allocation3 + $0x78] sm:$0xff]  }
  0xd5   : > { %943 = vxpose.xlu1.c.b16.cont [3/8] (narrow) %v3737_v5, 16  ;;  %3367 = vmatprep.subr.bf16.mxu0 %v3752_v16  ;;  %v3759_v27 = vld [vmem:[#allocation3 + $0x28] sm:$0xff]   ;;  %v3763_v31 = vld [vmem:[#allocation3 + $0x38] sm:$0xff]   ;;  %v843_v35 = vld [vmem:[%s5247_s12] sm:$0xff] }
  0xd6   : > { %v844_v39 = vld [vmem:[%s5247_s12 + $0x8] sm:$0xff] }
  0xd8   : > { %960 = vxpose.xlu0.c.b16.cont [4/8] (narrow) %v3738_v6, 16  ;;  %3368 = vmatpush3.bf16.msra.mxu0 %v3753_v19 }
  0xd9   : > { %944 = vxpose.xlu1.c.b16.cont [4/8] (narrow) %v3739_v7, 16  ;;  %3369 = vmatprep.subr.bf16.mxu0 %v3754_v20 }
  0xdc   : > { %961 = vxpose.xlu0.c.b16.cont [5/8] (narrow) %v3740_v8, 16  ;;  %3370 = vmatpush3.bf16.msra.mxu0 %v3755_v23 }
  0xdd   : > { %945 = vxpose.xlu1.c.b16.cont [5/8] (narrow) %v3741_v9, 16  ;;  %3371 = vmatprep.subr.bf16.mxu0 %v3756_v24 }
  0xe0   : > { %962 = vxpose.xlu0.c.b16.cont [6/8] (narrow) %v3742_v10, 16  ;;  %3372 = vmatpush3.bf16.msra.mxu0 %v3757_v25 }
  0xe1   : > { %946 = vxpose.xlu1.c.b16.cont [6/8] (narrow) %v3743_v12, 16  ;;  %3373 = vmatprep.subr.bf16.mxu0 %v3758_v26 }
  0xe4   : > { %963 = vxpose.xlu0.c.b16.cont [7/8] (narrow) %v3744_v17, 16  ;;  %3374 = vmatpush3.bf16.msra.mxu0 %v3759_v27 }
  0xe5   : > { %947 = vxpose.xlu1.c.b16.cont [7/8] (narrow) %v3745_v18, 16  ;;  %3375 = vmatprep.subr.bf16.mxu0 %v3760_v28 }
  0xe8   : > { %964 = vxpose.xlu0.c.b16.end [8/8] (narrow) %v3746_v21, 16  ;;  %3376 = vmatpush3.bf16.msra.mxu0 %v3761_v29 }
  0xe9   : > { %948 = vxpose.xlu1.c.b16.end [8/8] (narrow) %v3747_v22, 16  ;;  %3377 = vmatprep.subr.bf16.mxu0 %v3762_v30 }
  0xec   : > { %3378 = vmatpush3.bf16.msra.mxu0 %v3763_v31 }
 0x132   : > { %v965_v32 = vpop.trf.xlu0 }
 0x133   : > { %1101 = vmatprep.mubr.bf16.mxu0 %v965_v32  ;;  %v949_v33 = vpop.trf.xlu1 }
 0x134   : > { %1102 = vmatmul.mubr.bf16.vlgmr.msra.gmra.mrb[0].mxu0 %v949_v33 }
 0x207   : > { %v3379_v34 = vpop.f32.mrb[0].mxu0 }
 0x208   : > { %v3380_v36 = vpop.f32.mrb[1].mxu0 }
 0x209   : > { %v3381_v37 = vadd.f32 %v3380_v36, %v3379_v34  ;;  %v3382_v38 = vpop.f32.mrb[2].mxu0 }
 0x20a   : > { %v3383_v40 = vpop.f32.mrb[3].mxu0 }
 0x20b   : > { %v1104_v41 = vadd.f32 %v3381_v37, %v843_v35  ;;  %v3384_v42 = vadd.f32 %v3383_v40, %v3382_v38 }
 0x20d   : > { %1110 = vst [vmem:[#allocation2] sm:$0xff] %v1104_v41  ;;  %v1107_v43 = vadd.f32 %v3384_v42, %v844_v39 }
 0x20f   : > { %1111 = vst [vmem:[#allocation2 + $0x8] sm:$0xff] %v1107_v43 }
 0x210 PF: > { %v3799_v44 = vld [vmem:[%s4615_s4 + $0x4] ss:$12 sps:$4 sm:$0xff]   ;;  %v3801_v45 = vld [vmem:[%s4615_s4] ss:$12 sps:$4 sm:$0xff]   ;;  %v4209_v46 = vmov 0   ;;  %v4210_v47 = vmov 0.0   ;;  %v1149_v9 = vlaneseq  ;;  %s5248_s18 = scalar_lea.vmem %s5146_s6, %s4599_s2 }
 0x211   : > { %1324 = vmatprep.mubr.bf16.mxu0 %v4209_v46  ;;  %3457 = vmatprep.subr.bf16.mxu1 %v4210_v47  ;;  %v3802_v48 = vld [vmem:[%s4615_s4 + $0x1c] ss:$12 sps:$4 sm:$0xff]   ;;  %v3804_v49 = vld [vmem:[%s4615_s4 + $0x18] ss:$12 sps:$4 sm:$0xff]   ;;  %v3805_v50 = vld [vmem:[%s4615_s4 + $0x34] ss:$12 sps:$4 sm:$0xff]  }
 0x212   : > { %1292 = vmatprep.subr.bf16.mxu0 %v3799_v44  ;;  %v3807_v51 = vld [vmem:[%s4615_s4 + $0x30] ss:$12 sps:$4 sm:$0xff]   ;;  %v3808_v52 = vld [vmem:[%s4615_s4 + $0x4c] ss:$12 sps:$4 sm:$0xff]   ;;  %v3810_v53 = vld [vmem:[%s4615_s4 + $0x48] ss:$12 sps:$4 sm:$0xff]  }
 0x213   : > { %1293 = vmatpush1.bf16.msra.mxu0 %v3801_v45  ;;  %v3811_v54 = vld [vmem:[%s4615_s4 + $0x64] ss:$12 sps:$4 sm:$0xff]   ;;  %v3823_v55 = vld [vmem:[%s4615_s4 + $0x8] ss:$12 sps:$4 sm:$0xff]   ;;  %v3824_v56 = vld [vmem:[%s4615_s4 + $0x20] ss:$12 sps:$4 sm:$0xff]  }
 0x214   : > { %1294 = vmatprep.subr.bf16.mxu0 %v3802_v48  ;;  %3458 = vmatpush3.bf16.msra.mxu1 %v3823_v55  ;;  %v3813_v57 = vld [vmem:[%s4615_s4 + $0x60] ss:$12 sps:$4 sm:$0xff]   ;;  %v3814_v58 = vld [vmem:[%s4615_s4 + $0x7c] ss:$12 sps:$4 sm:$0xff]   ;;  %v3816_v59 = vld [vmem:[%s4615_s4 + $0x78] ss:$12 sps:$4 sm:$0xff]  }
 0x215   : > { %3459 = vmatprep.subr.bf16.mxu1 %v4210_v47  ;;  %v3817_v60 = vld [vmem:[%s4615_s4 + $0x94] ss:$12 sps:$4 sm:$0xff]   ;;  %v3825_v61 = vld [vmem:[%s4615_s4 + $0x38] ss:$12 sps:$4 sm:$0xff]   ;;  %v3826_v62 = vld [vmem:[%s4615_s4 + $0x50] ss:$12 sps:$4 sm:$0xff]  }
 0x216   : > { %v3819_v63 = vld [vmem:[%s4615_s4 + $0x90] ss:$12 sps:$4 sm:$0xff]   ;;  %v3820_v0 = vld [vmem:[%s4615_s4 + $0xac] ss:$12 sps:$4 sm:$0xff]   ;;  %v3827_v1 = vld [vmem:[%s4615_s4 + $0x68] ss:$12 sps:$4 sm:$0xff]  }
 0x217   : > { %1295 = vmatpush1.bf16.msra.mxu0 %v3804_v49  ;;  %v3822_v2 = vld [vmem:[%s4615_s4 + $0xa8] ss:$12 sps:$4 sm:$0xff]   ;;  %v1112_v3 = vld [vmem:[#allocation2] sm:$0xff]  ;;  %v3830_v8 = vld [vmem:[%s4615_s4 + $0xb0] ss:$12 sps:$4 sm:$0xff]   ;;  %vm4211_vm0 = vmmov 0  }
 0x218   : > { %1296 = vmatprep.subr.bf16.mxu0 %v3805_v50  ;;  %3460 = vmatpush3.bf16.msra.mxu1 %v3824_v56  ;;  %v1113_v4 = vld [vmem:[#allocation2 + $0x8] sm:$0xff]  ;;  %v3829_v7 = vld [vmem:[%s4615_s4 + $0x98] ss:$12 sps:$4 sm:$0xff]   ;;  %v4716_v10 = vshrl.u32 %v1149_v9, 7  ;;  %v1147_v12 = vld [vmem:[%s4624_s15] sm:$0x7] }
 0x219   : > { %3461 = vmatprep.subr.bf16.mxu1 %v4210_v47  ;;  %v3828_v5 = vld [vmem:[%s4615_s4 + $0x80] ss:$12 sps:$4 sm:$0xff]   ;;  %v1114_v6 = vpack.c.bf16 %v1113_v4, %v1112_v3  ;;  %3473 = vmatprep.mubr.msk.bf16.mxu1 %vm4211_vm0, %v4210_v47  ;;  %vm1379_vm1 = vcmask 130048   ;;  %s4212_s4 = smov 112   ;;  %s4213_s15 = smov 80   ;;  %vm2402_vm2 = vcmask 261120  }
 0x21a   : > { %v1151_v11 = vsub.s32 0, %v4716_v10  ;;  %v1155_v13 = vsub.s32 1, %v4716_v10  ;;  %v1159_v27 = vsub.s32 2, %v4716_v10  ;;  %s4214_s23 = smov 64   ;;  %s4215_s16 = smov 48   ;;  %vm2405_vm3 = vcmask 392192  }
 0x21b   : > { %1297 = vmatpush1.bf16.msra.mxu0 %v3807_v51  ;;  %s4216_s1 = smov 32   ;;  %s4217_s30 = smov 16   ;;  %vm2408_vm4 = vcmask 523264   ;;  %vm2411_vm5 = vcmask 654336   ;;  %vm2414_vm6 = vcmask 785408   ;;  %vm2417_vm7 = vcmask 916480  }
 0x21c   : > { %1298 = vmatprep.subr.bf16.mxu0 %v3808_v52  ;;  %3462 = vmatpush3.bf16.msra.mxu1 %v3825_v61  ;;  %v1152_v14 = vrot.slane %v1147_v12, %v1151_v11  ;;  %v1156_v16 = vrot.slane %v1147_v12, %v1155_v13  ;;  %v1160_v28 = vrot.slane %v1147_v12, %v1159_v27  ;;  %s4218_s21 = smov 96   ;;  %s5249_s28 = sld [smem:[#allocation36_spill]] }
 0x21d   : > { %3463 = vmatprep.subr.bf16.mxu1 %v4210_v47  ;;  %p3355_p12 = scmp.ne.s32.totalorder %s4183_s24, 1 }
 0x21f   : > { %1299 = vmatpush1.bf16.msra.mxu0 %v3810_v53 }
 0x220   : > { %1300 = vmatprep.subr.bf16.mxu0 %v3811_v54  ;;  %3464 = vmatpush3.bf16.msra.mxu1 %v3826_v62 }
 0x221   : > { %3465 = vmatprep.subr.bf16.mxu1 %v4210_v47 }
 0x222   : > { %s5250_s27 = scalar_lea.vmem %s5249_s28, %s4599_s2 }
 0x223   : > { %1301 = vmatpush1.bf16.msra.mxu0 %v3813_v57 }
 0x224   : > { %1302 = vmatprep.subr.bf16.mxu0 %v3814_v58  ;;  %3466 = vmatpush3.bf16.msra.mxu1 %v3827_v1 }
 0x225   : > { %3467 = vmatprep.subr.bf16.mxu1 %v4210_v47 }
 0x227   : > { %1303 = vmatpush1.bf16.msra.mxu0 %v3816_v59 }
 0x228   : > { %1304 = vmatprep.subr.bf16.mxu0 %v3817_v60  ;;  %3468 = vmatpush3.bf16.msra.mxu1 %v3828_v5 }
 0x229   : > { %3469 = vmatprep.subr.bf16.mxu1 %v4210_v47 }
 0x22b   : > { %1305 = vmatpush1.bf16.msra.mxu0 %v3819_v63 }
 0x22c   : > { %1306 = vmatprep.subr.bf16.mxu0 %v3820_v0  ;;  %3470 = vmatpush3.bf16.msra.mxu1 %v3829_v7 }
 0x22d   : > { %3471 = vmatprep.subr.bf16.mxu1 %v4210_v47 }
 0x22f   : > { %1307 = vmatpush1.bf16.msra.mxu0 %v3822_v2 }
 0x230   : > { %3501 = vmatprep.subr.bf16.mxu0 %v4210_v47  ;;  %3472 = vmatpush3.bf16.msra.mxu1 %v3830_v8 }
 0x231   : > { %3477 = vmatprep.subr.bf16.mxu1 %v4210_v47 }
 0x232   : > { %1325 = vmatmul.mubr.bf16.vlgmr.msra.gmra.mrb[0].mxu0 %v1114_v6 }
 0x233   : > { %3503 = vmatprep.mubr.msk.bf16.mxu0 %vm4211_vm0, %v4210_v47  ;;  %3474 = vmatmul.mubr.bf16.vlgmr.msra.gmra.mrb[0].mxu1 %v1114_v6 }
 0x234   : > { %3479 = vmatprep.mubr.msk.bf16.mxu1 %vm4211_vm0, %v4210_v47 }
 0x305   : > { %v1326_v15 = vpop.f32.mrb[0].mxu0 }
 0x306   : > { %v1328_v17 = vpop.f32.mrb[1].mxu0  ;;  %v1327_v19 = vadd.f32 %v1326_v15, %v1152_v14  ;;  %v1369_v29 = vpop.f32.mrb[0].mxu1 }
 0x307   : > { %v1330_v18 = vpop.f32.mrb[2].mxu0  ;;  %v1329_v22 = vadd.f32 %v1328_v17, %v1156_v16  ;;  %v1370_v30 = vadd.f32 %v1369_v29, %v1160_v28  ;;  %v3475_v31 = vpop.f32.mrb[1].mxu1 }
 0x308   : > { %v1331_v20 = vadd.f32 %v1330_v18, %v1152_v14  ;;  %v1332_v21 = vpop.f32.mrb[3].mxu0  ;;  %v1372_v32 = vpop.f32.mrb[2].mxu1 }
 0x309   : > { %v1333_v23 = vadd.f32 %v1332_v21, %v1156_v16  ;;  %v1373_v33 = vadd.f32 %v1372_v32, %v1160_v28  ;;  %v3476_v34 = vpop.f32.mrb[3].mxu1 }
 0x30a   : > { %v1376_v24 = vpack.c.bf16 %v1331_v20, %v1327_v19 }
 0x30b   : > { %v1377_v25 = vpack.c.bf16 %v1333_v23, %v1329_v22  ;;  %v4731_v35 = vpack.c.bf16 %v1373_v33, %v1370_v30 }
 0x30d   : > { %v1384_v26 = vsel %vm1379_vm1, %v1377_v25, 0 }
 0x30e   : > { %3478 = vmatpush3.bf16.xpose.msra.mxu1 %v1384_v26 }
 0x30f   : > { %3483 = vmatprep.subr.bf16.mxu1 %v4210_v47 }
 0x315   : > { %3480 = vmatmul.mubr.msk.bf16.vlgmr.msra.gmra.mrb[4].mxu1 %vm1379_vm1, %v1376_v24 }
 0x316   : > { %3485 = vmatprep.mubr.msk.bf16.mxu1 %vm4211_vm0, %v4210_v47  ;;  %3484 = vmatpush3.bf16.msra.mxu1 %v4731_v35 }
 0x317   : > { %3489 = vmatprep.subr.bf16.mxu1 %v4210_v47 }
 0x3e8   : > { %v1420_v36 = vpop.f32.mrb[4].mxu1 }
 0x3e9   : > { %v3481_v37 = vpop.f32.mrb[5].mxu1  ;;  %v1427_v38 = vsel %vm1379_vm1, %v1420_v36, -inf }
 0x3ea   : > { %1428 = vmax.xlane.f32.xlu0 %v1427_v38  ;;  %v1423_v39 = vpop.f32.mrb[6].mxu1 }
 0x3eb   : > { %v3482_v40 = vpop.f32.mrb[7].mxu1  ;;  %v1430_v41 = vsel %vm1379_vm1, %v1423_v39, -inf }
 0x3ee   : > { %1431 = vmax.xlane.f32.xlu0 %v1430_v41 }
 0x404   : > { %1498 = vrot.lane.b32.xlu0 %v1377_v25, %s4212_s4 }
 0x408   : > { %1741 = vrot.lane.b32.xlu0 %v1377_v25, %s4213_s15 }
 0x40c   : > { %1862 = vrot.lane.b32.xlu0 %v1377_v25, %s4214_s23 }
 0x410   : > { %1983 = vrot.lane.b32.xlu0 %v1377_v25, %s4215_s16 }
 0x414   : > { %2104 = vrot.lane.b32.xlu0 %v1377_v25, %s4216_s1 }
 0x418   : > { %2225 = vrot.lane.b32.xlu0 %v1377_v25, %s4217_s30 }
 0x477   : > { %v1429_v42 = vpop.xlane.xlu0 %1428 }
 0x478   : > { %v1433_v43 = vsub.f32 %v1420_v36, %v1429_v42 }
 0x47a   : > { %v1435_v44 = vmul.f32 1.442695, %v1433_v43 }
 0x47b   : > { %v1432_v45 = vpop.xlane.xlu0 %1431 }
 0x47c   : > { %3879 = vpow2.f32 %v1435_v44  ;;  %v1434_v48 = vsub.f32 %v1423_v39, %v1432_v45 }
 0x47e   : > { %v1437_v49 = vmul.f32 1.442695, %v1434_v48 }
 0x47f   : > { %v1499_v57 = vpop.permute.xlu0 %1498 }
 0x480   : > { %3881 = vpow2.f32 %v1437_v49  ;;  %v1504_v2 = vsel %vm1379_vm1, %v1499_v57, 0 }
 0x483   : > { %v1742_v0 = vpop.permute.xlu0 %1741 }
 0x484   : > { %v1747_v4 = vsel %vm1379_vm1, %v1742_v0, 0 }
 0x486   : > { %v3880_v50 = vpop.eup %3879 }
 0x487   : > { %v1439_v51 = vsel %vm1379_vm1, %v3880_v50, 0.0  ;;  %v1863_v5 = vpop.permute.xlu0 %1862 }
 0x488   : > { %1440 = vadd.xlane.f32.xlu1 %v1439_v51  ;;  %v1868_v7 = vsel %vm1379_vm1, %v1863_v5, 0 }
 0x48a   : > { %v3882_v52 = vpop.eup %3881 }
 0x48b   : > { %v1442_v53 = vsel %vm1379_vm1, %v3882_v52, 0.0  ;;  %v1984_v8 = vpop.permute.xlu0 %1983 }
 0x48c   : > { %1443 = vadd.xlane.f32.xlu1 %v1442_v53  ;;  %v1989_v12 = vsel %vm1379_vm1, %v1984_v8, 0 }
 0x48f   : > { %v2105_v14 = vpop.permute.xlu0 %2104 }
 0x490   : > { %v2110_v16 = vsel %vm1379_vm1, %v2105_v14, 0 }
 0x493   : > { %v2226_v17 = vpop.permute.xlu0 %2225 }
 0x494   : > { %v2231_v19 = vsel %vm1379_vm1, %v2226_v17, 0 }
 0x49d   : > { %1495 = vrot.lane.b32.xlu1 %v1376_v24, %s4212_s4 }
 0x4a1   : > { %1620 = vrot.lane.b32.xlu1 %v1377_v25, %s4218_s21 }
 0x4a5   : > { %1618 = vrot.lane.b32.xlu1 %v1376_v24, %s4218_s21 }
 0x4a9   : > { %1739 = vrot.lane.b32.xlu1 %v1376_v24, %s4213_s15 }
 0x4ad   : > { %1860 = vrot.lane.b32.xlu1 %v1376_v24, %s4214_s23 }
 0x4b1   : > { %1981 = vrot.lane.b32.xlu1 %v1376_v24, %s4215_s16 }
 0x4b5   : > { %2102 = vrot.lane.b32.xlu1 %v1376_v24, %s4216_s1 }
 0x4b9   : > { %2223 = vrot.lane.b32.xlu1 %v1376_v24, %s4217_s30 }
 0x515   : > { %v1441_v54 = vpop.xlane.xlu1 %1440 }
 0x516   : > { %3883 = vrcp.f32 %v1441_v54 }
 0x519   : > { %v1444_v55 = vpop.xlane.xlu1 %1443 }
 0x51a   : > { %3885 = vrcp.f32 %v1444_v55 }
 0x51d   : > { %v1496_v56 = vpop.permute.xlu1 %1495 }
 0x520   : > { %v3884_v59 = vpop.eup %3883 }
 0x521   : > { %v1621_v58 = vpop.permute.xlu1 %1620  ;;  %v1446_v62 = vmul.f32 %v3884_v59, %v3880_v50 }
 0x522   : > { %v1626_v60 = vsel %vm1379_vm1, %v1621_v58, 0 }
 0x523   : > { %3502 = vmatpush3.bf16.xpose.msra.mxu0 %v1626_v60 }
 0x524   : > { %v3886_v61 = vpop.eup %3885  ;;  %3513 = vmatprep.subr.bf16.mxu0 %v4210_v47 }
 0x525   : > { %v1448_v63 = vmul.f32 %v3886_v61, %v3882_v52  ;;  %v1619_v3 = vpop.permute.xlu1 %1618 }
 0x527   : > { %v1449_v1 = vpack.c.bf16 %v1448_v63, %v1446_v62 }
 0x529   : > { %3486 = vmatmul.mubr.msk.bf16.vlgmr.msra.gmra.mrb[8].mxu1 %vm1379_vm1, %v1449_v1  ;;  %v1740_v6 = vpop.permute.xlu1 %1739 }
 0x52a   : > { %3490 = vmatpush3.bf16.xpose.msra.mxu1 %v1504_v2  ;;  %3504 = vmatmul.mubr.msk.bf16.vlgmr.msra.gmra.mrb[4].mxu0 %vm1379_vm1, %v1619_v3 }
 0x52b   : > { %3514 = vmatpush3.bf16.xpose.msra.mxu0 %v1747_v4  ;;  %3491 = vmatprep.mubr.msk.bf16.mxu1 %vm4211_vm0, %v4210_v47 }
 0x52c   : > { %3515 = vmatprep.mubr.msk.bf16.mxu0 %vm4211_vm0, %v4210_v47  ;;  %3525 = vmatprep.subr.bf16.mxu0 %v4210_v47 }
 0x52d   : > { %3495 = vmatprep.subr.bf16.mxu1 %v4210_v47  ;;  %v1861_v9 = vpop.permute.xlu1 %1860 }
 0x531   : > { %3492 = vmatmul.mubr.msk.bf16.vlgmr.msra.gmra.mrb[12].mxu1 %vm1379_vm1, %v1496_v56  ;;  %v1982_v15 = vpop.permute.xlu1 %1981 }
 0x532   : > { %3516 = vmatmul.mubr.msk.bf16.vlgmr.msra.gmra.mrb[8].mxu0 %vm1379_vm1, %v1740_v6  ;;  %3497 = vmatprep.mubr.msk.bf16.mxu1 %vm4211_vm0, %v4210_v47 }
 0x533   : > { %3526 = vmatpush3.bf16.xpose.msra.mxu0 %v1868_v7  ;;  %3527 = vmatprep.mubr.msk.bf16.mxu0 %vm4211_vm0, %v4210_v47 }
 0x534   : > { %3537 = vmatprep.subr.bf16.mxu0 %v4210_v47 }
 0x535   : > { %v2103_v18 = vpop.permute.xlu1 %2102 }
 0x539   : > { %v2224_v20 = vpop.permute.xlu1 %2223 }
 0x53a   : > { %3528 = vmatmul.mubr.msk.bf16.vlgmr.msra.gmra.mrb[12].mxu0 %vm1379_vm1, %v1861_v9 }
 0x53b   : > { %3538 = vmatpush3.bf16.xpose.msra.mxu0 %v1989_v12  ;;  %3539 = vmatprep.mubr.msk.bf16.mxu0 %vm4211_vm0, %v4210_v47 }
 0x53c   : > { %3549 = vmatprep.subr.bf16.mxu0 %v4210_v47 }
 0x542   : > { %3540 = vmatmul.mubr.msk.bf16.vlgmr.msra.gmra.mrb[16].mxu0 %vm1379_vm1, %v1982_v15 }
 0x543   : > { %3550 = vmatpush3.bf16.xpose.msra.mxu0 %v2110_v16  ;;  %3551 = vmatprep.mubr.msk.bf16.mxu0 %vm4211_vm0, %v4210_v47 }
 0x544   : > { %3561 = vmatprep.subr.bf16.mxu0 %v4210_v47 }
 0x54a   : > { %3552 = vmatmul.mubr.msk.bf16.vlgmr.msra.gmra.mrb[20].mxu0 %vm1379_vm1, %v2103_v18 }
 0x54b   : > { %3562 = vmatpush3.bf16.xpose.msra.mxu0 %v2231_v19  ;;  %3563 = vmatprep.mubr.msk.bf16.mxu0 %vm4211_vm0, %v4210_v47 }
 0x54c   : > { %3573 = vmatprep.subr.bf16.mxu0 %v4210_v47 }
 0x552   : > { %3564 = vmatmul.mubr.msk.bf16.vlgmr.msra.gmra.mrb[24].mxu0 %vm1379_vm1, %v2224_v20 }
 0x553   : > { %3589 = vmatprep.mubr.msk.bf16.mxu0 %vm4211_vm0, %v4210_v47 }
 0x5fc   : > { %v4791_v21 = vpop.f32.mrb[8].mxu1 }
 0x5fd   : > { %v3487_v22 = vpop.f32.mrb[9].mxu1  ;;  %v4793_v23 = vpop.f32.mrb[4].mxu0 }
 0x5fe   : > { %v4795_v24 = vpop.f32.mrb[10].mxu1  ;;  %v3505_v25 = vpop.f32.mrb[5].mxu0  ;;  %v1669_v40 = vsel %vm1379_vm1, %v4793_v23, -inf }
 0x5ff   : > { %v3488_v26 = vpop.f32.mrb[11].mxu1  ;;  %v4797_v27 = vpop.f32.mrb[6].mxu0 }
 0x600   : > { %v3506_v28 = vpop.f32.mrb[7].mxu0  ;;  %v1672_v43 = vsel %vm1379_vm1, %v4797_v27, -inf }
 0x604   : > { %v4799_v29 = vpop.f32.mrb[12].mxu1 }
 0x605   : > { %v3493_v30 = vpop.f32.mrb[13].mxu1  ;;  %v4801_v31 = vpop.f32.mrb[8].mxu0  ;;  %v1547_v32 = vsel %vm1379_vm1, %v4799_v29, -inf }
 0x606   : > { %v3517_v33 = vpop.f32.mrb[9].mxu0  ;;  %1548 = vmax.xlane.f32.xlu0 %v1547_v32  ;;  %v4805_v34 = vpop.f32.mrb[14].mxu1  ;;  %v1790_v50 = vsel %vm1379_vm1, %v4801_v31, -inf }
 0x607   : > { %v3494_v36 = vpop.f32.mrb[15].mxu1  ;;  %v1786_v37 = vpop.f32.mrb[10].mxu0  ;;  %v1550_v38 = vsel %vm1379_vm1, %v4805_v34, -inf }
 0x608   : > { %v3518_v39 = vpop.f32.mrb[11].mxu0  ;;  %1551 = vmax.xlane.f32.xlu1 %v1550_v38  ;;  %v1793_v41 = vsel %vm1379_vm1, %v1786_v37, -inf }
 0x60a   : > { %1670 = vmax.xlane.f32.xlu0 %v1669_v40 }
 0x60c   : > { %1794 = vmax.xlane.f32.xlu1 %v1793_v41 }
 0x60d   : > { %v4812_v42 = vpop.f32.mrb[12].mxu0 }
 0x60e   : > { %v3529_v44 = vpop.f32.mrb[13].mxu0  ;;  %1673 = vmax.xlane.f32.xlu0 %v1672_v43  ;;  %v1911_v52 = vsel %vm1379_vm1, %v4812_v42, -inf }
 0x60f   : > { %v1907_v45 = vpop.f32.mrb[14].mxu0 }
 0x610   : > { %v3530_v48 = vpop.f32.mrb[15].mxu0  ;;  %v1914_v49 = vsel %vm1379_vm1, %v1907_v45, -inf }
 0x611   : > { %1915 = vmax.xlane.f32.xlu1 %v1914_v49 }
 0x612   : > { %1791 = vmax.xlane.f32.xlu0 %v1790_v50 }
 0x615   : > { %v4819_v51 = vpop.f32.mrb[16].mxu0 }
 0x616   : > { %v3541_v53 = vpop.f32.mrb[17].mxu0  ;;  %1912 = vmax.xlane.f32.xlu0 %v1911_v52  ;;  %v2032_v57 = vsel %vm1379_vm1, %v4819_v51, -inf }
 0x617   : > { %v2028_v54 = vpop.f32.mrb[18].mxu0 }
 0x618   : > { %v3542_v55 = vpop.f32.mrb[19].mxu0  ;;  %v2035_v56 = vsel %vm1379_vm1, %v2028_v54, -inf }
 0x619   : > { %2036 = vmax.xlane.f32.xlu1 %v2035_v56 }
 0x61a   : > { %2033 = vmax.xlane.f32.xlu0 %v2032_v57 }
 0x61d   : > { %v4826_v58 = vpop.f32.mrb[20].mxu0 }
 0x61e   : > { %v3553_v59 = vpop.f32.mrb[21].mxu0  ;;  %v2153_v60 = vsel %vm1379_vm1, %v4826_v58, -inf }
 0x61f   : > { %v4830_v61 = vpop.f32.mrb[22].mxu0  ;;  %2154 = vmax.xlane.f32.xlu0 %v2153_v60 }
 0x620   : > { %v3554_v62 = vpop.f32.mrb[23].mxu0  ;;  %v2156_v63 = vsel %vm1379_vm1, %v4830_v61, -inf }
 0x621   : > { %2157 = vmax.xlane.f32.xlu1 %v2156_v63 }
 0x625   : > { %v4834_v0 = vpop.f32.mrb[24].mxu0 }
 0x626   : > { %v3565_v1 = vpop.f32.mrb[25].mxu0  ;;  %v2274_v2 = vsel %vm1379_vm1, %v4834_v0, -inf }
 0x627   : > { %v4838_v3 = vpop.f32.mrb[26].mxu0  ;;  %2275 = vmax.xlane.f32.xlu0 %v2274_v2 }
 0x628   : > { %v3566_v4 = vpop.f32.mrb[27].mxu0  ;;  %v2277_v5 = vsel %vm1379_vm1, %v4838_v3, -inf }
 0x629   : > { %2278 = vmax.xlane.f32.xlu1 %v2277_v5 }
 0x693   : > { %v1549_v6 = vpop.xlane.xlu0 %1548 }
 0x694   : > { %v1553_v28 = vsub.f32 %v4799_v29, %v1549_v6 }
 0x695   : > { %v1552_v7 = vpop.xlane.xlu1 %1551 }
 0x697   : > { %v1671_v8 = vpop.xlane.xlu0 %1670 }
 0x698   : > { %v1675_v9 = vsub.f32 %v4793_v23, %v1671_v8 }
 0x699   : > { %v1795_v12 = vpop.xlane.xlu1 %1794 }
 0x69a   : > { %v1677_v14 = vmul.f32 1.442695, %v1675_v9  ;;  %v1797_v15 = vsub.f32 %v1786_v37, %v1795_v12 }
 0x69b   : > { %v1674_v16 = vpop.xlane.xlu0 %1673 }
 0x69c   : > { %3887 = vpow2.f32 %v1677_v14  ;;  %v1676_v17 = vsub.f32 %v4797_v27, %v1674_v16  ;;  %v1800_v18 = vmul.f32 1.442695, %v1797_v15  ;;  %v1555_v27 = vmul.f32 1.442695, %v1553_v28 }
 0x69e   : > { %v1679_v19 = vmul.f32 1.442695, %v1676_v17  ;;  %v1916_v20 = vpop.xlane.xlu1 %1915 }
 0x69f   : > { %v1918_v22 = vsub.f32 %v1907_v45, %v1916_v20  ;;  %v1792_v25 = vpop.xlane.xlu0 %1791 }
 0x6a0   : > { %3889 = vpow2.f32 %v1679_v19  ;;  %v1796_v26 = vsub.f32 %v4801_v31, %v1792_v25 }
 0x6a1   : > { %3891 = vpow2.f32 %v1800_v18  ;;  %v1921_v30 = vmul.f32 1.442695, %v1918_v22 }
 0x6a2   : > { %v1798_v23 = vmul.f32 1.442695, %v1796_v26 }
 0x6a3   : > { %v1913_v32 = vpop.xlane.xlu0 %1912 }
 0x6a4   : > { %3893 = vpow2.f32 %v1798_v23  ;;  %v1917_v33 = vsub.f32 %v4812_v42, %v1913_v32  ;;  %v1554_v42 = vsub.f32 %v4805_v34, %v1552_v7 }
 0x6a5   : > { %3895 = vpow2.f32 %v1921_v30 }
 0x6a6   : > { %v4847_v36 = vpop.eup %3887  ;;  %v1919_v37 = vmul.f32 1.442695, %v1917_v33  ;;  %v2037_v38 = vpop.xlane.xlu1 %2036  ;;  %v1557_v50 = vmul.f32 1.442695, %v1554_v42 }
 0x6a7   : > { %v2039_v39 = vsub.f32 %v2028_v54, %v2037_v38  ;;  %v2034_v40 = vpop.xlane.xlu0 %2033  ;;  %v1681_v31 = vsel %vm1379_vm1, %v4847_v36, 0.0 }
 0x6a8   : > { %3897 = vpow2.f32 %v1919_v37  ;;  %v2038_v29 = vsub.f32 %v4819_v51, %v2034_v40  ;;  %1682 = vadd.xlane.f32.xlu0 %v1681_v31 }
 0x6a9   : > { %3899 = vpow2.f32 %v1555_v27  ;;  %v2042_v43 = vmul.f32 1.442695, %v2039_v39 }
 0x6aa   : > { %v4852_v41 = vpop.eup %3889  ;;  %v2040_v44 = vmul.f32 1.442695, %v2038_v29 }
 0x6ab   : > { %v1684_v45 = vsel %vm1379_vm1, %v4852_v41, 0.0  ;;  %v4857_v48 = vpop.eup %3891 }
 0x6ac   : > { %3901 = vpow2.f32 %v2040_v44  ;;  %1685 = vadd.xlane.f32.xlu1 %v1684_v45  ;;  %v1805_v52 = vsel %vm1379_vm1, %v4857_v48, 0.0  ;;  %v2155_v4 = vpop.xlane.xlu0 %2154 }
 0x6ad   : > { %3903 = vpow2.f32 %v2042_v43  ;;  %v2159_v5 = vsub.f32 %v4826_v58, %v2155_v4 }
 0x6ae   : > { %v4859_v49 = vpop.eup %3893  ;;  %3905 = vpow2.f32 %v1557_v50  ;;  %v2158_v7 = vpop.xlane.xlu1 %2157 }
 0x6af   : > { %v1802_v51 = vsel %vm1379_vm1, %v4859_v49, 0.0  ;;  %v4865_v34 = vpop.eup %3895  ;;  %v2161_v6 = vmul.f32 1.442695, %v2159_v5  ;;  %v2160_v8 = vsub.f32 %v4830_v61, %v2158_v7 }
 0x6b0   : > { %1803 = vadd.xlane.f32.xlu0 %v1802_v51  ;;  %1806 = vadd.xlane.f32.xlu1 %v1805_v52  ;;  %v1926_v55 = vsel %vm1379_vm1, %v4865_v34, 0.0 }
 0x6b1   : > { %3907 = vpow2.f32 %v2161_v6  ;;  %v2163_v12 = vmul.f32 1.442695, %v2160_v8 }
 0x6b2   : > { %v4867_v53 = vpop.eup %3897 }
 0x6b3   : > { %v1923_v54 = vsel %vm1379_vm1, %v4867_v53, 0.0  ;;  %v4873_v56 = vpop.eup %3899  ;;  %3909 = vpow2.f32 %v2163_v12 }
 0x6b4   : > { %1924 = vadd.xlane.f32.xlu0 %v1923_v54  ;;  %1927 = vadd.xlane.f32.xlu1 %v1926_v55  ;;  %v1559_v59 = vsel %vm1379_vm1, %v4873_v56, 0.0  ;;  %v2276_v9 = vpop.xlane.xlu0 %2275 }
 0x6b5   : > { %v2280_v14 = vsub.f32 %v4834_v0, %v2276_v9 }
 0x6b6   : > { %v4875_v57 = vpop.eup %3901  ;;  %v2279_v15 = vpop.xlane.xlu1 %2278 }
 0x6b7   : > { %v2044_v60 = vsel %vm1379_vm1, %v4875_v57, 0.0  ;;  %v4881_v62 = vpop.eup %3903  ;;  %v2282_v16 = vmul.f32 1.442695, %v2280_v14  ;;  %v2281_v17 = vsub.f32 %v4838_v3, %v2279_v15 }
 0x6b8   : > { %1560 = vadd.xlane.f32.xlu0 %v1559_v59  ;;  %2045 = vadd.xlane.f32.xlu1 %v2044_v60  ;;  %v2047_v63 = vsel %vm1379_vm1, %v4881_v62, 0.0  ;;  %v4885_v1 = vpop.eup %3905 }
 0x6b9   : > { %v1562_v2 = vsel %vm1379_vm1, %v4885_v1, 0.0  ;;  %3911 = vpow2.f32 %v2282_v16  ;;  %v2284_v19 = vmul.f32 1.442695, %v2281_v17 }
 0x6bb   : > { %v4897_v18 = vpop.eup %3907  ;;  %3913 = vpow2.f32 %v2284_v19 }
 0x6bc   : > { %2048 = vadd.xlane.f32.xlu1 %v2047_v63  ;;  %v2165_v58 = vsel %vm1379_vm1, %v4897_v18, 0.0 }
 0x6bd   : > { %v4901_v20 = vpop.eup %3909 }
 0x6be   : > { %v2168_v61 = vsel %vm1379_vm1, %v4901_v20, 0.0 }
 0x6c0   : > { %1563 = vadd.xlane.f32.xlu1 %v1562_v2 }
 0x6c3   : > { %v4905_v0 = vpop.eup %3911 }
 0x6c4   : > { %v2286_v3 = vsel %vm1379_vm1, %v4905_v0, 0.0 }
 0x6c5   : > { %v4909_v22 = vpop.eup %3913 }
 0x6c6   : > { %v2289_v25 = vsel %vm1379_vm1, %v4909_v22, 0.0 }
 0x6ce   : > { %1571 = vrot.lane.b32.xlu0 %v4731_v35, %s4212_s4 }
 0x6d1   : > { %1692 = vrot.lane.b32.xlu1 %v4731_v35, %s4218_s21 }
 0x6ed   : > { %2166 = vadd.xlane.f32.xlu0 %v2165_v58 }
 0x6f5   : > { %2169 = vadd.xlane.f32.xlu1 %v2168_v61 }
 0x6f9   : > { %2287 = vadd.xlane.f32.xlu1 %v2286_v3 }
 0x6fd   : > { %2290 = vadd.xlane.f32.xlu1 %v2289_v25 }
 0x703   : > { %1813 = vrot.lane.b32.xlu0 %v4731_v35, %s4213_s15 }
 0x707   : > { %2055 = vrot.lane.b32.xlu0 %v4731_v35, %s4215_s16 }
 0x70b   : > { %2176 = vrot.lane.b32.xlu0 %v4731_v35, %s4216_s1 }
 0x70e   : > { %1934 = vrot.lane.b32.xlu1 %v4731_v35, %s4214_s23 }
 0x70f   : > { %2297 = vrot.lane.b32.xlu0 %v4731_v35, %s4217_s30 }
 0x735   : > { %v1683_v26 = vpop.xlane.xlu0 %1682 }
 0x739   : > { %v1686_v28 = vpop.xlane.xlu1 %1685 }
 0x73d   : > { %v1804_v30 = vpop.xlane.xlu0 %1803  ;;  %v1807_v23 = vpop.xlane.xlu1 %1806 }
 0x741   : > { %v1925_v32 = vpop.xlane.xlu0 %1924  ;;  %v1928_v33 = vpop.xlane.xlu1 %1927 }
 0x742   : > { %3915 = vrcp.f32 %v1925_v32 }
 0x743   : > { %3917 = vrcp.f32 %v1928_v33 }
 0x745   : > { %v1561_v27 = vpop.xlane.xlu0 %1560  ;;  %v2046_v37 = vpop.xlane.xlu1 %2045 }
 0x746   : > { %3919 = vrcp.f32 %v2046_v37 }
 0x749   : > { %v1572_v38 = vpop.permute.xlu0 %1571  ;;  %v2049_v39 = vpop.xlane.xlu1 %2048 }
 0x74a   : > { %3921 = vrcp.f32 %v2049_v39  ;;  %3496 = vmatpush3.bf16.msra.mxu1 %v1572_v38  ;;  %v3831_v39 = vld [vmem:[%s4580_s29] sm:$0xff]  }
 0x74b   : > { %3507 = vmatprep.subr.bf16.mxu1 %v4210_v47  ;;  %3923 = vrcp.f32 %v1561_v27  ;;  %3574 = vmatpush3.bf16.msra.mxu0 %v3831_v39 }
 0x74c   : > { %v3916_v40 = vpop.eup %3915  ;;  %3575 = vmatprep.subr.bf16.mxu0 %v4210_v47 }
 0x74d   : > { %v3918_v35 = vpop.eup %3917  ;;  %v1930_v31 = vmul.f32 %v3916_v40, %v4867_v53  ;;  %v1564_v29 = vpop.xlane.xlu1 %1563 }
 0x74e   : > { %v1932_v42 = vmul.f32 %v3918_v35, %v4865_v34  ;;  %3925 = vrcp.f32 %v1564_v29 }
 0x74f   : > { %3927 = vrcp.f32 %v1686_v28 }
 0x750   : > { %v1933_v43 = vpack.c.bf16 %v1932_v42, %v1930_v31  ;;  %v3920_v44 = vpop.eup %3919  ;;  %3929 = vrcp.f32 %v1683_v26  ;;  %v3832_v42 = vld [vmem:[%s4580_s29 + $0x8] sm:$0xff]  }
 0x751   : > { %v2051_v50 = vmul.f32 %v3920_v44, %v4875_v57  ;;  %v1693_v34 = vpop.permute.xlu1 %1692  ;;  %3931 = vrcp.f32 %v1804_v30  ;;  %3576 = vmatpush3.bf16.msra.mxu0 %v3832_v42 }
 0x752   : > { %3933 = vrcp.f32 %v1807_v23  ;;  %3577 = vmatprep.subr.bf16.mxu0 %v4210_v47 }
 0x754   : > { %v3922_v45 = vpop.eup %3921 }
 0x755   : > { %v2053_v51 = vmul.f32 %v3922_v45, %v4881_v62  ;;  %v3924_v52 = vpop.eup %3923 }
 0x756   : > { %v1566_v59 = vmul.f32 %v3924_v52, %v4873_v56 }
 0x757   : > { %v2054_v54 = vpack.c.bf16 %v2053_v51, %v2051_v50  ;;  %v3834_v50 = vld [vmem:[%s4580_s29 + $0x18] sm:$0xff]  }
 0x758   : > { %v3926_v55 = vpop.eup %3925 }
 0x759   : > { %v1568_v53 = vmul.f32 %v3926_v55, %v4885_v1  ;;  %v3928_v63 = vpop.eup %3927  ;;  %v3835_v55 = vld [vmem:[%s4580_s29 + $0x20] sm:$0xff]  }
 0x75a   : > { %v3930_v2 = vpop.eup %3929  ;;  %v1690_v57 = vmul.f32 %v3928_v63, %v4852_v41 }
 0x75b   : > { %v1569_v60 = vpack.c.bf16 %v1568_v53, %v1566_v59  ;;  %v1688_v62 = vmul.f32 %v3930_v2, %v4847_v36  ;;  %v3932_v56 = vpop.eup %3931 }
 0x75c   : > { %v3934_v1 = vpop.eup %3933  ;;  %v1809_v6 = vmul.f32 %v3932_v56, %v4859_v49  ;;  %v3838_v56 = vld [vmem:[%s4580_s29 + $0x38] sm:$0xff]  }
 0x75d   : > { %3498 = vmatmul.mubr.msk.bf16.vlgmr.msra.gmra.mrb[16].mxu1 %vm1379_vm1, %v1569_v60  ;;  %v1691_v4 = vpack.c.bf16 %v1690_v57, %v1688_v62  ;;  %v1811_v7 = vmul.f32 %v3934_v1, %v4857_v48  ;;  %v3836_v60 = vld [vmem:[%s4580_s29 + $0x28] sm:$0xff]   ;;  %v3837_v57 = vld [vmem:[%s4580_s29 + $0x30] sm:$0xff]  }
 0x75e   : > { %3508 = vmatpush3.bf16.msra.mxu1 %v1693_v34  ;;  %3509 = vmatprep.mubr.msk.bf16.mxu1 %vm4211_vm0, %v4210_v47 }
 0x75f   : > { %3519 = vmatprep.subr.bf16.mxu1 %v4210_v47  ;;  %v1812_v8 = vpack.c.bf16 %v1811_v7, %v1809_v6 }
 0x765   : > { %3510 = vmatmul.mubr.msk.bf16.vlgmr.msra.gmra.mrb[20].mxu1 %vm1379_vm1, %v1691_v4 }
 0x766   : > { %3521 = vmatprep.mubr.msk.bf16.mxu1 %vm4211_vm0, %v4210_v47 }
 0x77a   : > { %v2167_v5 = vpop.xlane.xlu0 %2166 }
 0x77e   : > { %v1814_v41 = vpop.permute.xlu0 %1813 }
 0x77f   : > { %3520 = vmatpush3.bf16.msra.mxu1 %v1814_v41 }
 0x780   : > { %3531 = vmatprep.subr.bf16.mxu1 %v4210_v47 }
 0x782   : > { %3522 = vmatmul.mubr.msk.bf16.vlgmr.msra.gmra.mrb[24].mxu1 %vm1379_vm1, %v1812_v8  ;;  %v2170_v36 = vpop.xlane.xlu1 %2169  ;;  %v2056_v48 = vpop.permute.xlu0 %2055 }
 0x783   : > { %3533 = vmatprep.mubr.msk.bf16.mxu1 %vm4211_vm0, %v4210_v47  ;;  %3935 = vrcp.f32 %v2170_v36 }
 0x784   : > { %3937 = vrcp.f32 %v2167_v5 }
 0x786   : > { %v2288_v9 = vpop.xlane.xlu1 %2287  ;;  %v2177_v15 = vpop.permute.xlu0 %2176 }
 0x78a   : > { %v2291_v12 = vpop.xlane.xlu1 %2290  ;;  %v2298_v3 = vpop.permute.xlu0 %2297 }
 0x78b   : > { %3939 = vrcp.f32 %v2291_v12 }
 0x78c   : > { %3941 = vrcp.f32 %v2288_v9 }
 0x78d   : > { %v3936_v49 = vpop.eup %3935 }
 0x78e   : > { %v1935_v14 = vpop.permute.xlu1 %1934  ;;  %v3938_v16 = vpop.eup %3937  ;;  %v2174_v17 = vmul.f32 %v3936_v49, %v4901_v20 }
 0x78f   : > { %3532 = vmatpush3.bf16.msra.mxu1 %v1935_v14  ;;  %v2172_v19 = vmul.f32 %v3938_v16, %v4897_v18 }
 0x790   : > { %3543 = vmatprep.subr.bf16.mxu1 %v4210_v47 }
 0x791   : > { %v2175_v58 = vpack.c.bf16 %v2174_v17, %v2172_v19 }
 0x792   : > { %3534 = vmatmul.mubr.msk.bf16.vlgmr.msra.gmra.mrb[28].mxu1 %vm1379_vm1, %v1933_v43  ;;  %v3833_v43 = vld [vmem:[%s4580_s29 + $0x10] sm:$0xff]  }
 0x793   : > { %3544 = vmatpush3.bf16.msra.mxu1 %v2056_v48  ;;  %3545 = vmatprep.mubr.msk.bf16.mxu1 %vm4211_vm0, %v4210_v47 }
 0x794   : > { %3555 = vmatprep.subr.bf16.mxu1 %v4210_v47  ;;  %3578 = vmatpush3.bf16.msra.mxu0 %v3833_v43 }
 0x795   : > { %v3940_v61 = vpop.eup %3939  ;;  %3579 = vmatprep.subr.bf16.mxu0 %v4210_v47 }
 0x796   : > { %v3942_v25 = vpop.eup %3941  ;;  %v2295_v26 = vmul.f32 %v3940_v61, %v4909_v22 }
 0x797   : > { %v2293_v28 = vmul.f32 %v3942_v25, %v4905_v0 }
 0x798   : > { %3580 = vmatpush3.bf16.msra.mxu0 %v3834_v50 }
 0x799   : > { %v2296_v20 = vpack.c.bf16 %v2295_v26, %v2293_v28  ;;  %3581 = vmatprep.subr.bf16.mxu0 %v4210_v47 }
 0x79a   : > { %3546 = vmatmul.mubr.msk.bf16.vlgmr.msra.gmra.mrb[32].mxu1 %vm1379_vm1, %v2054_v54 }
 0x79b   : > { %3556 = vmatpush3.bf16.msra.mxu1 %v2177_v15  ;;  %3557 = vmatprep.mubr.msk.bf16.mxu1 %vm4211_vm0, %v4210_v47 }
 0x79c   : > { %3567 = vmatprep.subr.bf16.mxu1 %v4210_v47  ;;  %3582 = vmatpush3.bf16.msra.mxu0 %v3835_v55 }
 0x79d   : > { %3583 = vmatprep.subr.bf16.mxu0 %v4210_v47 }
 0x7a0   : > { %3584 = vmatpush3.bf16.msra.mxu0 %v3836_v60  ;;  %v3844_v60 = vld [vmem:[%s4586_s3 + $0x14] ss:$8 sps:$4 sm:$0xff]  }
 0x7a1   : > { %3585 = vmatprep.subr.bf16.mxu0 %v4210_v47 }
 0x7a2   : > { %3558 = vmatmul.mubr.msk.bf16.vlgmr.msra.gmra.mrb[36].mxu1 %vm1379_vm1, %v2175_v58 }
 0x7a3   : > { %3568 = vmatpush3.bf16.msra.mxu1 %v2298_v3  ;;  %3569 = vmatprep.mubr.msk.bf16.mxu1 %vm4211_vm0, %v4210_v47 }
 0x7a4   : > { %3586 = vmatpush3.bf16.msra.mxu0 %v3837_v57 }
 0x7a5   : > { %3587 = vmatprep.subr.bf16.mxu0 %v4210_v47 }
 0x7a8   : > { %3588 = vmatpush3.bf16.msra.mxu0 %v3838_v56 }
 0x7aa   : > { %3570 = vmatmul.mubr.msk.bf16.vlgmr.msra.gmra.mrb[40].mxu1 %vm1379_vm1, %v2296_v20 }
 0x7ab   : > { %2715 = vmatprep.mubr.bf16.mxu1 %v4209_v46 }
 0x830   : > { %v1611_v18 = vpop.f32.mrb[16].mxu1 }
 0x831   : > { %v3499_v30 = vpop.f32.mrb[17].mxu1 }
 0x832   : > { %v1614_v23 = vpop.f32.mrb[18].mxu1 }
 0x833   : > { %v3764_v32 = vpack.i.bf16 %v1614_v23, %v1611_v18  ;;  %v3500_v33 = vpop.f32.mrb[19].mxu1 }
 0x835   : > { %3765 = vrot.lane.b32.xlu1 %v3764_v32, %s4217_s30 }
 0x838   : > { %v1732_v27 = vpop.f32.mrb[20].mxu1 }
 0x839   : > { %v3511_v37 = vpop.f32.mrb[21].mxu1 }
 0x83a   : > { %v1735_v22 = vpop.f32.mrb[22].mxu1 }
 0x83b   : > { %v3769_v38 = vpack.i.bf16 %v1735_v22, %v1732_v27  ;;  %v3512_v0 = vpop.f32.mrb[23].mxu1 }
 0x83d   : > { %3770 = vrot.lane.b32.xlu0 %v3769_v38, %s4216_s1 }
 0x855   : > { %v1853_v46 = vpop.f32.mrb[24].mxu1 }
 0x856   : > { %v3523_v40 = vpop.f32.mrb[25].mxu1 }
 0x857   : > { %v1856_v35 = vpop.f32.mrb[26].mxu1 }
 0x858   : > { %v3774_v31 = vpack.i.bf16 %v1856_v35, %v1853_v46  ;;  %v3524_v29 = vpop.f32.mrb[27].mxu1 }
 0x85a   : > { %3775 = vrot.lane.b32.xlu1 %v3774_v31, %s4215_s16 }
 0x865   : > { %v1974_v44 = vpop.f32.mrb[28].mxu1 }
 0x866   : > { %v3535_v45 = vpop.f32.mrb[29].mxu1 }
 0x867   : > { %v1977_v51 = vpop.f32.mrb[30].mxu1 }
 0x868   : > { %v3779_v52 = vpack.i.bf16 %v1977_v51, %v1974_v44  ;;  %v3536_v54 = vpop.f32.mrb[31].mxu1  ;;  %v3309_v44 = vld [vmem:[%s5248_s18] ss:$0 sm:$0xff] }
 0x86a   : > { %3780 = vrot.lane.b32.xlu0 %v3779_v52, %s4214_s23 }
 0x86d   : > { %v2095_v59 = vpop.f32.mrb[32].mxu1 }
 0x86e   : > { %v3547_v53 = vpop.f32.mrb[33].mxu1 }
 0x86f   : > { %v2098_v63 = vpop.f32.mrb[34].mxu1  ;;  %v3841_v53 = vld [vmem:[%s4586_s3 + $0x4] ss:$8 sps:$4 sm:$0xff]  }
 0x870   : > { %v3784_v34 = vpack.i.bf16 %v2098_v63, %v2095_v59  ;;  %v3548_v2 = vpop.f32.mrb[35].mxu1  ;;  %v3839_v59 = vld [vmem:[%s4586_s3] ss:$8 sps:$4 sm:$0xff]   ;;  %2683 = vmatprep.subr.bf16.mxu1 %v3841_v53  ;;  %v3842_v63 = vld [vmem:[%s4586_s3 + $0x10] ss:$8 sps:$4 sm:$0xff]  }
 0x871   : > { %2684 = vmatpush1.bf16.msra.mxu1 %v3839_v59 }
 0x872   : > { %3785 = vrot.lane.b32.xlu1 %v3784_v34, %s4213_s15  ;;  %2685 = vmatprep.subr.bf16.mxu1 %v3844_v60 }
 0x875   : > { %v2216_v62 = vpop.f32.mrb[36].mxu1  ;;  %2686 = vmatpush1.bf16.msra.mxu1 %v3842_v63 }
 0x876   : > { %v3559_v4 = vpop.f32.mrb[37].mxu1 }
 0x877   : > { %v2219_v1 = vpop.f32.mrb[38].mxu1 }
 0x878   : > { %v3789_v5 = vpack.i.bf16 %v2219_v1, %v2216_v62  ;;  %v3560_v6 = vpop.f32.mrb[39].mxu1 }
 0x879   : > { %v3847_v6 = vld [vmem:[%s4586_s3 + $0x24] ss:$8 sps:$4 sm:$0xff]  }
 0x87a   : > { %3790 = vrot.lane.b32.xlu0 %v3789_v5, %s4218_s21  ;;  %2687 = vmatprep.subr.bf16.mxu1 %v3847_v6 }
 0x87d   : > { %v2337_v7 = vpop.f32.mrb[40].mxu1 }
 0x87e   : > { %v3571_v41 = vpop.f32.mrb[41].mxu1 }
 0x87f   : > { %v2340_v8 = vpop.f32.mrb[42].mxu1  ;;  %v3850_v41 = vld [vmem:[%s4586_s3 + $0x34] ss:$8 sps:$4 sm:$0xff]  }
 0x880   : > { %v3794_v36 = vpack.i.bf16 %v2340_v8, %v2337_v7  ;;  %v3572_v9 = vpop.f32.mrb[43].mxu1  ;;  %v3845_v7 = vld [vmem:[%s4586_s3 + $0x20] ss:$8 sps:$4 sm:$0xff]   ;;  %v3848_v8 = vld [vmem:[%s4586_s3 + $0x30] ss:$8 sps:$4 sm:$0xff]  }
 0x881   : > { %2688 = vmatpush1.bf16.msra.mxu1 %v3845_v7  ;;  %v3851_v9 = vld [vmem:[%s4586_s3 + $0x40] ss:$8 sps:$4 sm:$0xff]  }
 0x882   : > { %3795 = vrot.lane.b32.xlu1 %v3794_v36, %s4212_s4  ;;  %2689 = vmatprep.subr.bf16.mxu1 %v3850_v41  ;;  %v3853_v36 = vld [vmem:[%s4586_s3 + $0x44] ss:$8 sps:$4 sm:$0xff]  }
 0x885   : > { %2690 = vmatpush1.bf16.msra.mxu1 %v3848_v8 }
 0x886   : > { %2691 = vmatprep.subr.bf16.mxu1 %v3853_v36 }
 0x889   : > { %2692 = vmatpush1.bf16.msra.mxu1 %v3851_v9 }
 0x8a7   : > { %v3766_v12 = vpop.permute.xlu1 %3765 }
 0x8a8   : > { %v3768_v47 = vunpack.i.h.bf16 %v3766_v12  ;;  %v3767_v15 = vunpack.i.l.bf16 %v3766_v12  ;;  %v3856_v12 = vld [vmem:[%s4586_s3 + $0x54] ss:$8 sps:$4 sm:$0xff]  }
 0x8a9   : > { %2693 = vmatprep.subr.bf16.mxu1 %v3856_v12 }
 0x8aa   : > { %v2401_v28 = vsel %vm1379_vm1, %v4795_v24, %v3768_v47  ;;  %v2400_v20 = vsel %vm1379_vm1, %v4791_v21, %v3767_v15  ;;  %v3862_v47 = vld [vmem:[%s4586_s3 + $0x74] ss:$8 sps:$4 sm:$0xff]   ;;  %v3860_v15 = vld [vmem:[%s4586_s3 + $0x70] ss:$8 sps:$4 sm:$0xff]  }
 0x8af   : > { %v3771_v14 = vpop.permute.xlu0 %3770 }
 0x8b0   : > { %v3773_v16 = vunpack.i.h.bf16 %v3771_v14  ;;  %v3772_v17 = vunpack.i.l.bf16 %v3771_v14  ;;  %v3854_v14 = vld [vmem:[%s4586_s3 + $0x50] ss:$8 sps:$4 sm:$0xff]  }
 0x8b1   : > { %2694 = vmatpush1.bf16.msra.mxu1 %v3854_v14 }
 0x8b2   : > { %v2404_v23 = vsel %vm2402_vm2, %v2401_v28, %v3773_v16  ;;  %v2403_v32 = vsel %vm2402_vm2, %v2400_v20, %v3772_v17  ;;  %v3863_v16 = vld [vmem:[%s4588_s20 + $0x40] sm:$0xff]  }
 0x8b3   : > { %v3864_v17 = vld [vmem:[%s4588_s20] sm:$0xff]   ;;  %3435 = vmatprep.subr.bf16.mxu0 %v3863_v16 }
 0x8b4   : > { %v3871_v28 = vld [vmem:[%s4588_s20 + $0x60] sm:$0xff]  }
 0x8b5   : > { %v3872_v20 = vld [vmem:[%s4588_s20 + $0x20] sm:$0xff]  }
 0x8cc   : > { %v3776_v48 = vpop.permute.xlu1 %3775 }
 0x8cd   : > { %v3778_v58 = vunpack.i.h.bf16 %v3776_v48  ;;  %v3777_v61 = vunpack.i.l.bf16 %v3776_v48  ;;  %v3859_v48 = vld [vmem:[%s4586_s3 + $0x64] ss:$8 sps:$4 sm:$0xff]  }
 0x8ce   : > { %2695 = vmatprep.subr.bf16.mxu1 %v3859_v48 }
 0x8cf   : > { %v2407_v37 = vsel %vm2405_vm3, %v2404_v23, %v3778_v58  ;;  %v2406_v22 = vsel %vm2405_vm3, %v2403_v32, %v3777_v61  ;;  %v3866_v58 = vld [vmem:[%s4588_s20 + $0x8] sm:$0xff]   ;;  %v3867_v61 = vld [vmem:[%s4588_s20 + $0x50] sm:$0xff]  }
 0x8dc   : > { %v3781_v49 = vpop.permute.xlu0 %3780 }
 0x8dd   : > { %v3783_v25 = vunpack.i.h.bf16 %v3781_v49  ;;  %v3782_v26 = vunpack.i.l.bf16 %v3781_v49  ;;  %v3857_v49 = vld [vmem:[%s4586_s3 + $0x60] ss:$8 sps:$4 sm:$0xff]  }
 0x8de   : > { %2696 = vmatpush1.bf16.msra.mxu1 %v3857_v49 }
 0x8df   : > { %v2410_v38 = vsel %vm2408_vm4, %v2407_v37, %v3783_v25  ;;  %v2409_v0 = vsel %vm2408_vm4, %v2406_v22, %v3782_v26  ;;  %2697 = vmatprep.subr.bf16.mxu1 %v3862_v47  ;;  %v3869_v25 = vld [vmem:[%s4588_s20 + $0x58] sm:$0xff]  }
 0x8e0   : > { %v3870_v26 = vld [vmem:[%s4588_s20 + $0x18] sm:$0xff]  }
 0x8e2   : > { %2698 = vmatpush1.bf16.msra.mxu1 %v3860_v15 }
 0x8e4   : > { %v3786_v19 = vpop.permute.xlu1 %3785 }
 0x8e5   : > { %v3788_v18 = vunpack.i.h.bf16 %v3786_v19  ;;  %v3787_v30 = vunpack.i.l.bf16 %v3786_v19  ;;  %v3865_v19 = vld [vmem:[%s4588_s20 + $0x48] sm:$0xff]  }
 0x8e7   : > { %v2413_v21 = vsel %vm2411_vm5, %v2410_v38, %v3788_v18  ;;  %v2412_v39 = vsel %vm2411_vm5, %v2409_v0, %v3787_v30  ;;  %v3873_v18 = vld [vmem:[%s4588_s20 + $0x68] sm:$0xff]   ;;  %v3318_v0 = vld [vmem:[%s5250_s27] ss:$0 sm:$0xff] }
 0x8ec   : > { %v3791_v3 = vpop.permute.xlu0 %3790 }
 0x8ed   : > { %v3793_v33 = vunpack.i.h.bf16 %v3791_v3  ;;  %v3792_v27 = vunpack.i.l.bf16 %v3791_v3  ;;  %v3868_v3 = vld [vmem:[%s4588_s20 + $0x10] sm:$0xff]  }
 0x8ef   : > { %v2416_v35 = vsel %vm2414_vm6, %v2413_v21, %v3793_v33  ;;  %v2415_v31 = vsel %vm2414_vm6, %v2412_v39, %v3792_v27 }
 0x8f4   : > { %v3796_v24 = vpop.permute.xlu1 %3795 }
 0x8f5   : > { %v3798_v46 = vunpack.i.h.bf16 %v3796_v24  ;;  %v3797_v40 = vunpack.i.l.bf16 %v3796_v24 }
 0x8f7   : > { %v2419_v29 = vsel %vm2417_vm7, %v2416_v35, %v3798_v46  ;;  %v2418_v42 = vsel %vm2417_vm7, %v2415_v31, %v3797_v40  ;;  %v3319_v46 = vld [vmem:[%s760_s26] ss:$0 sm:$0xff] }
 0x8f8   : > { %v2420_v43 = vpack.c.bf16 %v2419_v29, %v2418_v42  ;;  %v3874_v42 = vld [vmem:[%s4588_s20 + $0x28] sm:$0xff]  }
 0x8fa   : > { %3590 = vmatmul.mubr.bf16.vlgmr.msra.gmra.mrb[28].mxu0 %v2420_v43  ;;  %v3875_v43 = vld [vmem:[%s4588_s20 + $0x70] sm:$0xff]  }
 0x8fb   : > { %3436 = vmatpush3.bf16.msra.mxu0 %v3864_v17 }
 0x8fc   : > { %3437 = vmatprep.subr.bf16.mxu0 %v3865_v19 }
 0x8ff   : > { %3438 = vmatpush3.bf16.msra.mxu0 %v3866_v58 }
 0x900   : > { %3439 = vmatprep.subr.bf16.mxu0 %v3867_v61 }
 0x903   : > { %3440 = vmatpush3.bf16.msra.mxu0 %v3868_v3 }
 0x904   : > { %3441 = vmatprep.subr.bf16.mxu0 %v3869_v25 }
 0x907   : > { %3442 = vmatpush3.bf16.msra.mxu0 %v3870_v26 }
 0x908   : > { %3443 = vmatprep.subr.bf16.mxu0 %v3871_v28 }
 0x90b   : > { %3444 = vmatpush3.bf16.msra.mxu0 %v3872_v20 }
 0x90c   : > { %3445 = vmatprep.subr.bf16.mxu0 %v3873_v18  ;;  %v3353_v18 = vld [vmem:[%s770_s9] ss:$0 sm:$0xff] }
 0x90f   : > { %3446 = vmatpush3.bf16.msra.mxu0 %v3874_v42 }
 0x910   : > { %3447 = vmatprep.subr.bf16.mxu0 %v3875_v43 }
 0x9cd   : > { %v2526_v45 = vpop.f32.mrb[28].mxu0 }
 0x9ce   : > { %v2527_v50 = vadd.f32 %v3309_v44, %v2526_v45  ;;  %v3591_v51 = vpop.f32.mrb[29].mxu0  ;;  %v3877_v45 = vld [vmem:[%s4588_s20 + $0x78] sm:$0xff]  }
 0x9cf   : > { %v2529_v52 = vpop.f32.mrb[30].mxu0  ;;  %v2591_v51 = vld [vmem:[%s4638_s25] sm:$0x3] }
 0x9d0   : > { %v2530_v54 = vadd.f32 %v3309_v44, %v2529_v52  ;;  %2535 = vadd.xlane.f32.xlu0 %v2527_v50  ;;  %v3592_v55 = vpop.f32.mrb[31].mxu0  ;;  %v3876_v44 = vld [vmem:[%s4588_s20 + $0x30] sm:$0xff]   ;;  %v2596_v52 = vrot.slane %v2591_v51, %v1151_v11 }
 0x9d1   : > { %3448 = vmatpush3.bf16.msra.mxu0 %v3876_v44 }
 0x9d2   : > { %2537 = vadd.xlane.f32.xlu1 %v2530_v54  ;;  %3449 = vmatprep.subr.bf16.mxu0 %v3877_v45 }
 0xa5d   : > { %v2536_v34 = vpop.xlane.xlu0 %2535 }
 0xa5e   : > { %v2540_v2 = vmul.f32 0.0078125, %v2536_v34 }
 0xa5f   : > { %v2538_v57 = vpop.xlane.xlu1 %2537 }
 0xa60   : > { %v2542_v62 = vsub.f32 %v2527_v50, %v2540_v2  ;;  %v2541_v4 = vmul.f32 0.0078125, %v2538_v57  ;;  %v3878_v50 = vld [vmem:[%s4588_s20 + $0x38] sm:$0xff]  }
 0xa61   : > { %3450 = vmatpush3.bf16.msra.mxu0 %v3878_v50 }
 0xa62   : > { %v5004_v56 = vsub.f32 %v2530_v54, %v2541_v4  ;;  %v2544_v1 = vmul.f32 %v2542_v62, %v2542_v62  ;;  %v2600_v54 = vrot.slane %v2591_v51, %v1155_v13  ;;  %v3336_v13 = vld [vmem:[%s767_s7] ss:$0 sm:$0xff] }
 0xa64   : > { %2546 = vadd.xlane.f32.xlu0 %v2544_v1  ;;  %v2545_v5 = vmul.f32 %v5004_v56, %v5004_v56 }
 0xa68   : > { %2548 = vadd.xlane.f32.xlu0 %v2545_v5 }
 0xaf1   : > { %v2547_v30 = vpop.xlane.xlu0 %2546 }
 0xaf2   : > { %v2550_v23 = vmul.f32 0.0078125, %v2547_v30 }
 0xaf4   : > { %v2552_v32 = vadd.f32 1e-05, %v2550_v23 }
 0xaf5   : > { %v2549_v33 = vpop.xlane.xlu0 %2548 }
 0xaf6   : > { %3943 = vrsqrt.f32 %v2552_v32  ;;  %v2551_v27 = vmul.f32 0.0078125, %v2549_v33  ;;  %v3354_v32 = vld [vmem:[%s773_s13] ss:$0 sm:$0xff] }
 0xaf8   : > { %v2553_v37 = vadd.f32 1e-05, %v2551_v27 }
 0xafa   : > { %3945 = vrsqrt.f32 %v2553_v37 }
 0xb00   : > { %v3944_v22 = vpop.eup %3943 }
 0xb01   : > { %v2556_v38 = vmul.f32 %v3944_v22, %v2542_v62 }
 0xb03   : > { %v2564_v39 = vmul.f32 %v3318_v0, %v2556_v38 }
 0xb04   : > { %v3946_v24 = vpop.eup %3945 }
 0xb05   : > { %v2557_v21 = vmul.f32 %v3946_v24, %v5004_v56  ;;  %v5042_v35 = vadd.f32 %v3319_v46, %v2564_v39 }
 0xb07   : > { %v2565_v40 = vmul.f32 %v3318_v0, %v2557_v21 }
 0xb09   : > { %v5044_v31 = vadd.f32 %v3319_v46, %v2565_v40 }
 0xb0b   : > { %v2574_v29 = vpack.c.bf16 %v5044_v31, %v5042_v35 }
 0xb0d   : > { %2716 = vmatmul.mubr.bf16.vlgmr.msra.gmra.mrb[44].mxu1 %v2574_v29 }
 0xbe0   : > { %v2717_v55 = vpop.f32.mrb[44].mxu1 }
 0xbe1   : > { %v2718_v59 = vadd.f32 %v2717_v55, %v2596_v52  ;;  %v2719_v53 = vpop.f32.mrb[45].mxu1 }
 0xbe2   : > { %v2720_v60 = vadd.f32 %v2719_v53, %v2600_v54  ;;  %v2721_v63 = vpop.f32.mrb[46].mxu1 }
 0xbe3   : > { %v2722_v34 = vadd.f32 %v2721_v63, %v2596_v52  ;;  %v2723_v2 = vpop.f32.mrb[47].mxu1  ;;  %v2726_v62 = vmax.f32 %v2718_v59, 0.0 }
 0xbe4   : > { %v2724_v57 = vadd.f32 %v2723_v2, %v2600_v54  ;;  %v2727_v56 = vmax.f32 %v2720_v60, 0.0 }
 0xbe5   : > { %v2728_v4 = vmax.f32 %v2722_v34, 0.0 }
 0xbe6   : > { %v2729_v1 = vmax.f32 %v2724_v57, 0.0 }
 0xbe7   : > { %v2730_v5 = vpack.c.bf16 %v2728_v4, %v2726_v62 }
 0xbe8   : > { %v2731_v6 = vpack.c.bf16 %v2729_v1, %v2727_v56 }
 0xbea   : > { %2899 = vmatprep.mubr.bf16.mxu0 %v2731_v6 }
 0xbeb   : > { %2900 = vmatmul.mubr.bf16.vlgmr.msra.gmra.mrb[32].mxu0 %v2730_v5 }
 0xcbe   : > { %v3451_v11 = vpop.f32.mrb[32].mxu0 }
 0xcbf   : > { %v3452_v10 = vpop.f32.mrb[33].mxu0 }
 0xcc0   : > { %v3453_v7 = vadd.f32 %v3452_v10, %v3451_v11  ;;  %v3454_v41 = vpop.f32.mrb[34].mxu0 }
 0xcc1   : > { %v3455_v8 = vpop.f32.mrb[35].mxu0 }
 0xcc2   : > { %v3456_v36 = vadd.f32 %v3455_v8, %v3454_v41  ;;  %v2902_v9 = vadd.f32 %v3453_v7, %v3336_v13 }
 0xcc4   : > { %2910 = vadd.xlane.f32.xlu0 %v2902_v9  ;;  %v2905_v12 = vadd.f32 %v3456_v36, %v3336_v13 }
 0xcc6   : > { %2912 = vadd.xlane.f32.xlu1 %v2905_v12 }
 0xd51   : > { %v2911_v14 = vpop.xlane.xlu0 %2910 }
 0xd52   : > { %v2914_v48 = vmul.f32 0.0078125, %v2911_v14 }
 0xd53   : > { %v2913_v49 = vpop.xlane.xlu1 %2912 }
 0xd54   : > { %v2916_v47 = vsub.f32 %v2902_v9, %v2914_v48  ;;  %v2915_v15 = vmul.f32 0.0078125, %v2913_v49 }
 0xd56   : > { %v2917_v16 = vsub.f32 %v2905_v12, %v2915_v15  ;;  %v2918_v17 = vmul.f32 %v2916_v47, %v2916_v47 }
 0xd58   : > { %2920 = vadd.xlane.f32.xlu0 %v2918_v17  ;;  %v2919_v19 = vmul.f32 %v2917_v16, %v2917_v16 }
 0xd5a   : > { %2922 = vadd.xlane.f32.xlu1 %v2919_v19 }
 0xde5   : > { %v2921_v58 = vpop.xlane.xlu0 %2920 }
 0xde6   : > { %v2924_v61 = vmul.f32 0.0078125, %v2921_v58 }
 0xde7   : > { %v2923_v3 = vpop.xlane.xlu1 %2922 }
 0xde8   : > { %v2926_v25 = vadd.f32 1e-05, %v2924_v61  ;;  %v2925_v26 = vmul.f32 0.0078125, %v2923_v3 }
 0xdea   : > { %3947 = vrsqrt.f32 %v2926_v25  ;;  %v2927_v28 = vadd.f32 1e-05, %v2925_v26 }
 0xdec   : > { %3949 = vrsqrt.f32 %v2927_v28 }
 0xdf4   : > { %v3948_v20 = vpop.eup %3947 }
 0xdf5   : > { %v2930_v30 = vmul.f32 %v3948_v20, %v2916_v47 }
 0xdf6   : > { %v3950_v23 = vpop.eup %3949 }
 0xdf7   : > { %v2938_v33 = vmul.f32 %v3353_v18, %v2930_v30  ;;  %v2931_v27 = vmul.f32 %v3950_v23, %v2917_v16 }
 0xdf9   : > { %v2946_v37 = vadd.f32 %v3354_v32, %v2938_v33  ;;  %v2939_v22 = vmul.f32 %v3353_v18, %v2931_v27  ;;  %2955 = sbr.rel (%p3355_p12) target bundleno = 3600 (0xe10), region = 104 }
 0xdfb   : > { %v2948_v38 = vadd.f32 %v2946_v37, %v5042_v35  ;;  %v2947_v0 = vadd.f32 %v3354_v32, %v2939_v22 }
 0xdfd   : > { %2950 = vst [vmem:[#allocation2] sm:$0xff] %v2948_v38  ;;  %v2949_v24 = vadd.f32 %v2947_v0, %v5044_v31 }
 0xdff   : > { %2951 = vst [vmem:[#allocation2 + $0x8] sm:$0xff] %v2949_v24  ;;  %v2956_v21 = vadd.f32 (!%p3355_p12), %v2949_v24, %v2948_v38 }
 0xe01   : > { %v2957_v39 = vrot.slane %v2956_v21, 4 }
 0xe03   : > { %v2958_v46 = vadd.f32 %v2957_v39, %v2956_v21 }
 0xe05   : > { %v2959_v40 = vrot.slane %v2958_v46, 2 }
 0xe07   : > { %v2960_v29 = vadd.f32 %v2959_v40, %v2958_v46 }
 0xe09   : > { %v2961_v42 = vrot.slane %v2960_v29, 1 }
 0xe0b   : > { %v2962_v43 = vadd.f32 %v2961_v42, %v2960_v29 }
 0xe0d   : > { %v2964_v44 = vmul.f32 0.0625, %v2962_v43 }
 0xe0f   : > { %2965 = vst [vmem:[%s4650_s11] sm:$0x1] %v2964_v44 }
 0xe10 PF: > { %s5255_s2 = sld [smem:[#allocation20_spill]]  ;;  %s5256_s13 = sld [smem:[#allocation28_spill]] }
 0xe11   : > { %s5257_s24 = sld [smem:[#allocation44_spill]]  ;;  %s2979_s29 = sshll.u32 %s4650_s11, 4  ;;  %s2980_s29 = int_to_ptr.vmem [resolvable:$true] %s2979_s29 }
 0xe12   : > { %s5259_s17 = sand.u32 1, %s4163_s19   ;;  %s4069_s3 = scalar_lea.vmem %s2980_s29, 16 }
 0xe13   : > { %s2967_s18 = scalar_lea.sflag [#allocation5], %s5259_s17  ;;  %p4070_p2 = scmp.ne.s32.totalorder %s2980_s29, %s4069_s3 }
 0xe14   : > { %s4219_s14 = smov [#allocation11]  }
 0xe15   : > { %s4073_s28 = sshll.u32 %s4219_s14, 4  ;;  %s4074_s28 = int_to_ptr.vmem [resolvable:$false] %s4073_s28 }
 0xe16   : > { %s3356_s9 = sshll.u32 %s5255_s2, 4  ;;  %p5260_p10 = scmp.ne.s32.totalorder %s5256_s13, 0 }
 0xe17   : > { %s5258_s30 = smov %s5257_s24  ;;  %s5081_s21 = scalar_lea.hbm %s5257_s24, %s3356_s9 }
 0xe18   : > { %p4071_p11 = pnand %p4070_p2, %p5260_p10  ;;  %s4075_s27 = scalar_lea.vmem %s4074_s28, 32 }
 0xe19   : > { %p4076_p5 = scmp.lt.s32.totalorder %s2980_s29, %s4074_s28  ;;  %p4077_p7 = scmp.lt.s32.totalorder %s4075_s27, %s4069_s3 }
 0xe1a   : > { %p4072_p6 = pneg %p4071_p11 }
 0xe1b   : > { %p4078_p0 = por %p4077_p7, %p4076_p5 }
 0xe1d   : > { %p4079_p4 = pnand %p4078_p0, %p4072_p6 }
 0xe1f   : > { %4082 = shalt.err (!%p4079_p4)
}
 0xe20   : > { %s4083_s11 = scalar_lea.hbm %s5081_s21, 16  ;;  %s4087_s10 = scalar_lea.hbm %s5258_s30, 32 }
 0xe21   : > { %p4084_p3 = scmp.ne.s32.totalorder %s5081_s21, %s4083_s11  ;;  %p4088_p13 = scmp.lt.u32.totalorder %s5081_s21, %s5258_s30 }
 0xe22   : > { %p4089_p1 = scmp.lt.u32.totalorder %s4087_s10, %s4083_s11  ;;  %p4091_p2 = scmp.lt.u32.totalorder %s4083_s11, %s5081_s21 }
 0xe23   : > { %p4085_p9 = pnand %p4084_p3, %p5260_p10 }
 0xe24   : > { %p4090_p12 = por %p4089_p1, %p4088_p13 }
 0xe25   : > { %p4086_p8 = pneg %p4085_p9 }
 0xe26   : > { %p4092_p11 = por %p4091_p2, %p4090_p12 }
 0xe28   : > { %p4093_p6 = pnand %p4092_p11, %p4086_p8 }
 0xe2a   : > { %4096 = shalt.err (!%p4093_p6)
}
 0xe2b   : > { %3605 = dma.vmem_to_hbm [thread:$0]  (%p5260_p10), %s2980_s29, 16, %s5081_s21, %s2967_s18  }
 0xe2c PF: > { %s5261_s20 = sld [smem:[#allocation23_spill]]  ;;  %s5262_s7 = sld [smem:[#allocation16_spill]] }
 0xe2d   : > { %s5263_s8 = sld [smem:[#allocation29_spill]] }
 0xe32   : > { %p3628_p5 = scmp.ge.s32.totalorder %s5261_s20, 2  ;;  %s2991_s5 = sand.u32 1, %s5262_s7  }
 0xe33   : > { %p5264_p7 = scmp.ne.s32.totalorder %s5263_s8, 0  ;;  %s2992_s4 = scalar_lea.sflag [#allocation5], %s2991_s5 }
 0xe35   : > { %p3622_p0 = pnand %p3628_p5, %p5264_p7 }
 0xe37   : > { %4154 = dma.done.wait (!%p3622_p0), %s2992_s4, 16  }
 0xe38   : > { %4156 = vsyncadd (!%p3622_p0), %s2992_s4, 4294967280  ;;  %s35_s28 = sadd.s32 1, %s5261_s20   ;;  %s5265_s15 = sld [smem:[#allocation17_spill]] }
 0xe39   : > { %p32_p4 = scmp.ge.s32.totalorder %s35_s28, 6   ;;  %s5266_s20 = sld [smem:[#allocation27_spill]] }
 0xe3a   : > { %s5267_s21 = sld [smem:[#allocation18_spill]]  ;;  %s5268_s22 = sld [smem:[#allocation19_spill]] }
 0xe3b   : > { %s5269_s23 = sld [smem:[#allocation26_spill]]  ;;  %s5270_s24 = sld [smem:[#allocation21_spill]] }
 0xe3c   : > { %s5271_s25 = sld [smem:[#allocation22_spill]]  ;;  %s5272_s26 = sld [smem:[#allocation24_spill]] }
 0xe3d   : > { %s5273_s27 = sld [smem:[#allocation25_spill]]  ;;  %s5274_s18 = smov %s4163_s19 }
 0xe3e   : > { %s5275_s19 = smov %s5265_s15  ;;  %34 = sbr.rel (!%p32_p4) target bundleno = 28 (0x1c), region = 192 }
 0xe45   :  { %2996 = vsyncpa [#allocation4], 1 }
 0xe46   :  { %2998 = vsyncpa [#allocation4 + $0x1], 1 }
 0xe47   :  { %2999 = vsyncpa [#allocation7], 1 }
 0xe48   :  { %3001 = vsyncpa [#allocation7 + $0x1], 1 }
 0xe49   :  { %3002 = vsyncpa [#allocation10], 1 }
 0xe4a   :  { %3004 = vsyncpa [#allocation10 + $0x1], 1 }
 0xe4b   :  { %3005 = vsyncpa [#allocation5], 1 }
 0xe4c   :  { %3007 = vsyncpa [#allocation5 + $0x1], 1 }

</bundles_post_ra>
